<compile_context>
chip_gen: v6e
topology: v6e:2x2x1
jax: 0.10.0
libtpu: 0.0.40
codegen_flags: <defaults>
</compile_context>

<pallas_src>
import jax
import jax.numpy as jnp
from jax.experimental import pallas as pl
from jax.experimental.pallas import tpu as pltpu

# ----------------------------- configuration --------------------------------
PAD = 0              # constants.PAD (padding_idx of the embedding)
VOCAB = 20
EMB = 8              # embedding_size
HIDDEN = 32          # hidden_size (decoder hidden size)
LAYERS = 2           # num_layers
H_ENC = HIDDEN // 2  # per-direction encoder hidden size (hidden_size % 2 == 0)
N_REST = max(LAYERS - 1, 1)


# ------------------------------ Pallas kernels -------------------------------
def _gru_cell(gi, gh, h):
    """PyTorch GRU cell update, gate order (r, z, n)."""
    hd = h.shape[-1]
    r = jax.nn.sigmoid(gi[:, :hd] + gh[:, :hd])
    z = jax.nn.sigmoid(gi[:, hd:2 * hd] + gh[:, hd:2 * hd])
    n = jnp.tanh(gi[:, 2 * hd:] + r * gh[:, 2 * hd:])
    return (1.0 - z) * n + z * h


def enc_bidir_kernel(gi_f_ref, gi_b_ref, mask_ref,
                     w_hh_f_ref, w_hh_b_ref, b_hh_f_ref, b_hh_b_ref,
                     out_ref, hn_ref, h_sc):
    """One bidirectional GRU layer: both directions advance per grid step.

    gi_* are the precomputed input gates (x @ W_ih + b_ih) for every step.
    out_ref is (2, S, B, H_ENC): [0]=forward outputs, [1]=backward outputs.
    hn_ref is (2, B, H_ENC): final hidden of each direction.
    h_sc   is (2, B, H_ENC): carried hidden state.
    """
    t = pl.program_id(0)
    s = pl.num_programs(0)
    tr = s - 1 - t

    @pl.when(t == 0)
    def _():
        h_sc[...] = jnp.zeros_like(h_sc)   # h0 = zeros (PyTorch default)

    h_f = h_sc[0]                          # (B, H)
    h_b = h_sc[1]
    gi_f = gi_f_ref[t]                     # (B, 3H)
    gi_b = gi_b_ref[tr]
    m_f = mask_ref[t]                      # (B, 1): 1 = valid step, 0 = padded
    m_b = mask_ref[tr]

    gh_f = jnp.dot(h_f, w_hh_f_ref[...],
                   preferred_element_type=jnp.float32) + b_hh_f_ref[...]
    gh_b = jnp.dot(h_b, w_hh_b_ref[...],
                   preferred_element_type=jnp.float32) + b_hh_b_ref[...]

    hnew_f = _gru_cell(gi_f, gh_f, h_f)
    hnew_b = _gru_cell(gi_b, gh_b, h_b)

    # pad_packed: outputs at padded positions are zero.
    out_ref[0, t] = m_f * hnew_f
    out_ref[1, tr] = m_b * hnew_b

    # pack_padded: hidden state frozen past the sequence length.
    hnext_f = m_f * hnew_f + (1.0 - m_f) * h_f
    hnext_b = m_b * hnew_b + (1.0 - m_b) * h_b
    h_sc[0] = hnext_f
    h_sc[1] = hnext_b

    @pl.when(t == s - 1)
    def _():
        hn_ref[0] = hnext_f
        hn_ref[1] = hnext_b


def decoder_kernel(gi0_ref, h0_ref, hc_ref,
                   w_hh_ref, b_hh_ref, w_ih_ref, b_ih_ref,
                   w1t_ref, w2ct_ref, w2qt_ref,
                   out_ref, h_sc):
    """Fused decoder: per grid step, LAYERS stacked GRU cells + GlobalAttention.

    gi0_ref: (T-1, B, 3H) precomputed embed_trg @ W_ih[0] + b_ih[0]
    h0_ref:  (LAYERS, B, H) initial hidden (from encoder)
    hc_ref:  (B, S, H) encoder outputs (attention context)
    w_hh/b_hh: stacked per-layer hidden-to-hidden weights
    w_ih/b_ih: stacked input-to-hidden weights for layers 1..LAYERS-1
    h_sc:    (LAYERS, B, H) carried hidden states
    """
    t = pl.program_id(0)

    @pl.when(t == 0)
    def _():
        h_sc[...] = h0_ref[...]

    gi = gi0_ref[t]                                    # (B, 3H) layer-0 input gates
    o = None
    for l in range(LAYERS):
        h = h_sc[l]                                    # (B, H)
        if l > 0:
            # TODO(synk): inter-layer dropout omitted (eval-mode identity).
            gi = jnp.dot(o, w_ih_ref[l - 1],
                         preferred_element_type=jnp.float32) + b_ih_ref[l - 1]
        gh = jnp.dot(h, w_hh_ref[l],
                     preferred_element_type=jnp.float32) + b_hh_ref[l]
        h_new = _gru_cell(gi, gh, h)
        h_sc[l] = h_new
        o = h_new

    # GlobalAttention: a = softmax(H (W1 q)); c = tanh(W2 [aH, q])
    q = o                                              # (B, H)
    hc = hc_ref[...]                                   # (B, S, H)
    q1 = jnp.dot(q, w1t_ref[...], preferred_element_type=jnp.float32)
    # NOTE: at these tiny S the contraction is left on the VPU; for large S an
    # einsum('bd,bsd->bs') MXU contraction would be preferable.
    scores = jnp.sum(hc * q1[:, None, :], axis=-1)     # (B, S)
    scores = scores - jnp.max(scores, axis=1, keepdims=True)
    e = jnp.exp(scores)
    a = e / jnp.sum(e, axis=1, keepdims=True)          # softmax(dim=1)
    c = jnp.sum(a[:, :, None] * hc, axis=1)            # (B, H)
    # W2 [c, q] == c @ W2[:, :H]^T + q @ W2[:, H:]^T (split to avoid concat)
    out_ref[t] = jnp.tanh(
        jnp.dot(c, w2ct_ref[...], preferred_element_type=jnp.float32)
        + jnp.dot(q, w2qt_ref[...], preferred_element_type=jnp.float32))


# ------------------------------ Pallas wrappers -------------------------------
def encoder_bidir_layer(x, mask, pf, pb):
    """One bidirectional GRU layer (fwd+bwd fused) over time.

    x:    (S, B, In) float32
    mask: (S, B, 1)  float32
    Returns (output (S, B, 2*H_ENC), hn (2, B, H_ENC)).
    """
    s, b, _ = x.shape
    h = H_ENC
    # Hoist the input-to-hidden matmuls out of the recurrence (one batched
    # matmul over all S steps per direction).
    gi_f = jnp.dot(x, pf['w_ih']) + pf['b_ih']         # (S, B, 3H)
    gi_b = jnp.dot(x, pb['w_ih']) + pb['b_ih']

    const2 = lambda t: (0, 0)
    const3 = lambda t: (0, 0, 0)
    const4 = lambda t: (0, 0, 0, 0)

    out_dir, hn = pl.pallas_call(
        enc_bidir_kernel,
        out_shape=(
            jax.ShapeDtypeStruct((2, s, b, h), jnp.float32),
            jax.ShapeDtypeStruct((2, b, h), jnp.float32),
        ),
        grid_spec=pltpu.PrefetchScalarGridSpec(
            num_scalar_prefetch=0,
            grid=(s,),
            in_specs=[
                pl.BlockSpec((s, b, 3 * h), const3),   # gi forward (resident)
                pl.BlockSpec((s, b, 3 * h), const3),   # gi backward (resident)
                pl.BlockSpec((s, b, 1), const3),       # mask (resident)
                pl.BlockSpec((h, 3 * h), const2),      # W_hh fwd
                pl.BlockSpec((h, 3 * h), const2),      # W_hh bwd
                pl.BlockSpec((1, 3 * h), const2),      # b_hh fwd
                pl.BlockSpec((1, 3 * h), const2),      # b_hh bwd
            ],
            out_specs=[
                pl.BlockSpec((2, s, b, h), const4),    # per-direction outputs
                pl.BlockSpec((2, b, h), const3),       # final hidden states
            ],
            scratch_shapes=[pltpu.VMEM((2, b, h), jnp.float32)],
        ),
        compiler_params=pltpu.CompilerParams(
            dimension_semantics=("arbitrary",)),
    )(gi_f, gi_b, mask, pf['w_hh'], pb['w_hh'], pf['b_hh'], pb['b_hh'])

    # (2, S, B, H) -> (S, B, 2*H) : concat [fwd | bwd] along feature.
    out = jnp.transpose(out_dir, (1, 2, 0, 3)).reshape(s, b, 2 * h)
    return out, hn


def decoder_forward(embed_trg, dec_h0, hc, dec_params, attn):
    """Fused decoder over all target steps in one pallas_call."""
    tm1, b, _ = embed_trg.shape
    hd = HIDDEN
    p0 = dec_params[0]
    gi0 = jnp.dot(embed_trg, p0['w_ih']) + p0['b_ih']  # (T-1, B, 3H)

    w_hh = jnp.stack([p['w_hh'] for p in dec_params])  # (L, H, 3H)
    b_hh = jnp.stack([p['b_hh'] for p in dec_params])  # (L, 1, 3H)
    if LAYERS > 1:
        w_ih_rest = jnp.stack([dec_params[l]['w_ih'] for l in range(1, LAYERS)])
        b_ih_rest = jnp.stack([dec_params[l]['b_ih'] for l in range(1, LAYERS)])
    else:  # placeholders, never read in-kernel
        w_ih_rest = jnp.zeros((1, hd, 3 * hd), jnp.float32)
        b_ih_rest = jnp.zeros((1, 1, 3 * hd), jnp.float32)

    const2 = lambda t: (0, 0)
    const3 = lambda t: (0, 0, 0)

    out = pl.pallas_call(
        decoder_kernel,
        out_shape=jax.ShapeDtypeStruct((tm1, b, hd), jnp.float32),
        grid_spec=pltpu.PrefetchScalarGridSpec(
            num_scalar_prefetch=0,
            grid=(tm1,),
            in_specs=[
                pl.BlockSpec((tm1, b, 3 * hd), const3),        # gi layer 0
                pl.BlockSpec((LAYERS, b, hd), const3),         # h0
                pl.BlockSpec(hc.shape, const3),                # encoder context
                pl.BlockSpec((LAYERS, hd, 3 * hd), const3),    # W_hh (all layers)
                pl.BlockSpec((LAYERS, 1, 3 * hd), const3),     # b_hh
                pl.BlockSpec((N_REST, hd, 3 * hd), const3),    # W_ih layers 1..
                pl.BlockSpec((N_REST, 1, 3 * hd), const3),     # b_ih layers 1..
                pl.BlockSpec((hd, hd), const2),                # attn L1^T
                pl.BlockSpec((hd, hd), const2),                # attn L2[:, :H]^T
                pl.BlockSpec((hd, hd), const2),                # attn L2[:, H:]^T
            ],
            out_specs=pl.BlockSpec((tm1, b, hd), const3),
            scratch_shapes=[pltpu.VMEM((LAYERS, b, hd), jnp.float32)],
        ),
        compiler_params=pltpu.CompilerParams(
            dimension_semantics=("arbitrary",)),
    )(gi0, dec_h0, hc, w_hh, b_hh, w_ih_rest, b_ih_rest,
      attn['w1t'], attn['w2ct'], attn['w2qt'])
    return out


# ------------------------------ parameter init --------------------------------
def init_params(key):
    def u(k, shape, scale=0.1):
        return jax.random.uniform(k, shape, jnp.float32, -scale, scale)

    keys = iter(jax.random.split(key, 64))
    params = {}

    emb = u(next(keys), (VOCAB, EMB))
    emb = emb.at[PAD].set(0.0)           # padding_idx=PAD
    params['embedding'] = emb

    enc = []
    for layer in range(LAYERS):
        in_sz = EMB if layer == 0 else 2 * H_ENC
        dirs = []
        for _ in range(2):               # forward / backward directions
            dirs.append(dict(
                w_ih=u(next(keys), (in_sz, 3 * H_ENC)),
                w_hh=u(next(keys), (H_ENC, 3 * H_ENC)),
                b_ih=u(next(keys), (1, 3 * H_ENC)),
                b_hh=u(next(keys), (1, 3 * H_ENC)),
            ))
        enc.append(dirs)
    params['encoder'] = enc

    dec = []
    for layer in range(LAYERS):
        in_sz = EMB if layer == 0 else HIDDEN
        dec.append(dict(
            w_ih=u(next(keys), (in_sz, 3 * HIDDEN)),
            w_hh=u(next(keys), (HIDDEN, 3 * HIDDEN)),
            b_ih=u(next(keys), (1, 3 * HIDDEN)),
            b_hh=u(next(keys), (1, 3 * HIDDEN)),
        ))
    params['decoder_rnn'] = dec

    params['attn_w1t'] = u(next(keys), (HIDDEN, HIDDEN))    # L1.weight^T
    params['attn_w2ct'] = u(next(keys), (HIDDEN, HIDDEN))   # L2.weight[:, :H]^T
    params['attn_w2qt'] = u(next(keys), (HIDDEN, HIDDEN))   # L2.weight[:, H:]^T
    return params


# ------------------------------ full forward ----------------------------------
def encoder_decoder_forward(params, src, lengths, trg):
    """src (S, B) int32, lengths (1, B) int32, trg (T, B) int32.

    Returns output (T-1, B, HIDDEN) float32, matching EncoderDecoder.forward.
    """
    s, b = src.shape
    lens = lengths.reshape(-1)
    emb = params['embedding']

    # ----- Encoder (bidirectional multi-layer GRU with length masking) -----
    embed_src = emb[src]                                  # (S, B, E)
    mask = (jnp.arange(s)[:, None] < lens[None, :]).astype(jnp.float32)[:, :, None]

    layer_in = embed_src
    hns = []
    for layer in range(LAYERS):
        pf, pb = params['encoder'][layer]
        layer_in, hn = encoder_bidir_layer(layer_in, mask, pf, pb)
        hns.append(hn)                                    # (2, B, H_ENC)
        # TODO(synk): inter-layer dropout omitted (eval-mode identity).
    h_encoder = layer_in                                  # (S, B, HIDDEN)

    # ----- encoder_hn2decoder_h0: per layer concat [fwd, bwd] along feature ----
    dec_h0 = jnp.stack(
        [jnp.transpose(hn, (1, 0, 2)).reshape(b, 2 * H_ENC) for hn in hns])

    # ----- Decoder (stacked GRU cells + global attention), input trg[:-1] -----
    trg_in = trg[:-1]
    embed_trg = emb[trg_in]                               # (T-1, B, E)
    hc = jnp.transpose(h_encoder, (1, 0, 2))              # (B, S, HIDDEN)
    attn = dict(w1t=params['attn_w1t'], w2ct=params['attn_w2ct'],
                w2qt=params['attn_w2qt'])
    return decoder_forward(embed_trg, dec_h0, hc, params['decoder_rnn'], attn)


# ---------------------------------- main ---------------------------------------
if __name__ == "__main__":
    key = jax.random.PRNGKey(0)
    kp, ks, kt = jax.random.split(key, 3)
    params = init_params(kp)

    S, B, T = 10, 2, 8
    lengths = jnp.array([[10, 7]], dtype=jnp.int32)       # (1, B), descending
    src = jax.random.randint(ks, (S, B), 1, VOCAB)
    valid = jnp.arange(S)[:, None] < lengths.reshape(-1)[None, :]
    src = jnp.where(valid, src, PAD).astype(jnp.int32)    # pad past lengths
    trg = jax.random.randint(kt, (T, B), 1, VOCAB).astype(jnp.int32)

    fwd = jax.jit(encoder_decoder_forward)
    out = jax.block_until_ready(fwd(params, src, lengths, trg))
    assert out.shape == (T - 1, B, HIDDEN), out.shape
    assert out.dtype == jnp.float32
    print("KERNEL_OK")
</pallas_src>

<mosaic_0001>
module attributes {stable_mosaic.version = 11 : i64} {
  func.func @enc_bidir_kernel(%arg0: i32, %arg1: memref<10x2x48xf32, #tpu.memory_space<vmem>>, %arg2: memref<10x2x48xf32, #tpu.memory_space<vmem>>, %arg3: memref<10x2x1xf32, #tpu.memory_space<vmem>>, %arg4: memref<16x48xf32, #tpu.memory_space<vmem>>, %arg5: memref<16x48xf32, #tpu.memory_space<vmem>>, %arg6: memref<1x48xf32, #tpu.memory_space<vmem>>, %arg7: memref<1x48xf32, #tpu.memory_space<vmem>>, %arg8: memref<2x10x2x16xf32, #tpu.memory_space<vmem>>, %arg9: memref<2x2x16xf32, #tpu.memory_space<vmem>>, %arg10: memref<2x2x16xf32, #tpu.memory_space<vmem>>) attributes {dimension_semantics = [#tpu.dimension_semantics<arbitrary>], iteration_bounds = array<i64: 10>, scalar_prefetch = 0 : i64, scratch_operands = 1 : i64, tpu.core_type = #tpu.core_type<tc>, window_params = [{pipeline_mode = #tpu.pipeline_mode<synchronous>, transform_indices = @transform_0, window_bounds = array<i64: 10, 2, 48>}, {pipeline_mode = #tpu.pipeline_mode<synchronous>, transform_indices = @transform_1, window_bounds = array<i64: 10, 2, 48>}, {pipeline_mode = #tpu.pipeline_mode<synchronous>, transform_indices = @transform_2, window_bounds = array<i64: 10, 2, 1>}, {pipeline_mode = #tpu.pipeline_mode<synchronous>, transform_indices = @transform_3, window_bounds = array<i64: 16, 48>}, {pipeline_mode = #tpu.pipeline_mode<synchronous>, transform_indices = @transform_4, window_bounds = array<i64: 16, 48>}, {pipeline_mode = #tpu.pipeline_mode<synchronous>, transform_indices = @transform_5, window_bounds = array<i64: 1, 48>}, {pipeline_mode = #tpu.pipeline_mode<synchronous>, transform_indices = @transform_6, window_bounds = array<i64: 1, 48>}, {pipeline_mode = #tpu.pipeline_mode<synchronous>, transform_indices = @transform_7, window_bounds = array<i64: 2, 10, 2, 16>}, {pipeline_mode = #tpu.pipeline_mode<synchronous>, transform_indices = @transform_8, window_bounds = array<i64: 2, 2, 16>}]} {
    %c9_i32 = arith.constant 9 : i32
    %0 = arith.subi %c9_i32, %arg0 : i32
    %c0_i32 = arith.constant 0 : i32
    %1 = arith.cmpi eq, %arg0, %c0_i32 : i32
    %2 = arith.extui %1 : i1 to i32
    %c0_i32_0 = arith.constant 0 : i32
    %3 = arith.cmpi ne, %2, %c0_i32_0 : i32
    scf.if %3 {
      %cst_44 = arith.constant 0.000000e+00 : f32
      %117 = vector.broadcast %cst_44 : f32 to vector<2x2x16xf32>
      %c0_45 = arith.constant 0 : index
      %c0_46 = arith.constant 0 : index
      %c0_47 = arith.constant 0 : index
      %118 = vector.load %arg10[%c0_45, %c0_46, %c0_47] : memref<2x2x16xf32, #tpu.memory_space<vmem>>, vector<2x2x16xf32>
      tpu.vector_store %arg10[%c0_45, %c0_46, %c0_47], %117 {strides = array<i32>} : memref<2x2x16xf32, #tpu.memory_space<vmem>>, vector<2x2x16xf32>,
    } else {
    }
    %c0 = arith.constant 0 : index
    %c0_1 = arith.constant 0 : index
    %c0_2 = arith.constant 0 : index
    %4 = vector.load %arg10[%c0, %c0_1, %c0_2] : memref<2x2x16xf32, #tpu.memory_space<vmem>>, vector<1x2x16xf32>
    %5 = vector.shape_cast %4 : vector<1x2x16xf32> to vector<2x16xf32>
    %c1 = arith.constant 1 : index
    %c0_3 = arith.constant 0 : index
    %c0_4 = arith.constant 0 : index
    %6 = vector.load %arg10[%c1, %c0_3, %c0_4] : memref<2x2x16xf32, #tpu.memory_space<vmem>>, vector<1x2x16xf32>
    %7 = vector.shape_cast %6 : vector<1x2x16xf32> to vector<2x16xf32>
    %8 = arith.index_cast %arg0 : i32 to index
    %c0_5 = arith.constant 0 : index
    %c0_6 = arith.constant 0 : index
    %9 = vector.load %arg1[%8, %c0_5, %c0_6] : memref<10x2x48xf32, #tpu.memory_space<vmem>>, vector<1x2x48xf32>
    %10 = vector.shape_cast %9 : vector<1x2x48xf32> to vector<2x48xf32>
    %11 = arith.index_cast %0 : i32 to index
    %c0_7 = arith.constant 0 : index
    %c0_8 = arith.constant 0 : index
    %12 = vector.load %arg2[%11, %c0_7, %c0_8] : memref<10x2x48xf32, #tpu.memory_space<vmem>>, vector<1x2x48xf32>
    %13 = vector.shape_cast %12 : vector<1x2x48xf32> to vector<2x48xf32>
    %14 = arith.index_cast %arg0 : i32 to index
    %c0_9 = arith.constant 0 : index
    %c0_10 = arith.constant 0 : index
    %15 = vector.load %arg3[%14, %c0_9, %c0_10] : memref<10x2x1xf32, #tpu.memory_space<vmem>>, vector<1x2x1xf32>
    %16 = vector.shape_cast %15 : vector<1x2x1xf32> to vector<2x1xf32>
    %17 = arith.index_cast %0 : i32 to index
    %c0_11 = arith.constant 0 : index
    %c0_12 = arith.constant 0 : index
    %18 = vector.load %arg3[%17, %c0_11, %c0_12] : memref<10x2x1xf32, #tpu.memory_space<vmem>>, vector<1x2x1xf32>
    %19 = vector.shape_cast %18 : vector<1x2x1xf32> to vector<2x1xf32>
    %c0_13 = arith.constant 0 : index
    %c0_14 = arith.constant 0 : index
    %20 = vector.load %arg4[%c0_13, %c0_14] : memref<16x48xf32, #tpu.memory_space<vmem>>, vector<16x48xf32>
    %cst = arith.constant dense<0.000000e+00> : vector<2x48xf32>
    %21 = tpu.matmul %5, %20, %cst {dimension_numbers = #tpu.dot_dimension_numbers<[1], [0], [0], [1], [0, 0, 1, 1], [], []>} : vector<2x16xf32>, vector<16x48xf32>, vector<2x48xf32> -> vector<2x48xf32>
    %c0_15 = arith.constant 0 : index
    %c0_16 = arith.constant 0 : index
    %22 = vector.load %arg6[%c0_15, %c0_16] : memref<1x48xf32, #tpu.memory_space<vmem>>, vector<1x48xf32>
    %23 = vector.broadcast %22 : vector<1x48xf32> to vector<2x48xf32>
    %24 = arith.addf %21, %23 : vector<2x48xf32>
    %c0_17 = arith.constant 0 : index
    %c0_18 = arith.constant 0 : index
    %25 = vector.load %arg5[%c0_17, %c0_18] : memref<16x48xf32, #tpu.memory_space<vmem>>, vector<16x48xf32>
    %cst_19 = arith.constant dense<0.000000e+00> : vector<2x48xf32>
    %26 = tpu.matmul %7, %25, %cst_19 {dimension_numbers = #tpu.dot_dimension_numbers<[1], [0], [0], [1], [0, 0, 1, 1], [], []>} : vector<2x16xf32>, vector<16x48xf32>, vector<2x48xf32> -> vector<2x48xf32>
    %c0_20 = arith.constant 0 : index
    %c0_21 = arith.constant 0 : index
    %27 = vector.load %arg7[%c0_20, %c0_21] : memref<1x48xf32, #tpu.memory_space<vmem>>, vector<1x48xf32>
    %28 = vector.broadcast %27 : vector<1x48xf32> to vector<2x48xf32>
    %29 = arith.addf %26, %28 : vector<2x48xf32>
    %30 = vector.extract_strided_slice %10 {offsets = [0, 0], sizes = [2, 16], strides = [1, 1]} : vector<2x48xf32> to vector<2x16xf32>
    %31 = vector.extract_strided_slice %24 {offsets = [0, 0], sizes = [2, 16], strides = [1, 1]} : vector<2x48xf32> to vector<2x16xf32>
    %32 = arith.addf %30, %31 : vector<2x16xf32>
    %33 = arith.negf %32 : vector<2x16xf32>
    %34 = math.exp %33 : vector<2x16xf32>
    %cst_22 = arith.constant 1.000000e+00 : f32
    %35 = vector.broadcast %cst_22 : f32 to vector<2x16xf32>
    %36 = arith.addf %35, %34 : vector<2x16xf32>
    %37 = arith.divf %35, %36 : vector<2x16xf32>
    %38 = vector.extract_strided_slice %10 {offsets = [0, 16], sizes = [2, 16], strides = [1, 1]} : vector<2x48xf32> to vector<2x16xf32>
    %39 = vector.extract_strided_slice %24 {offsets = [0, 16], sizes = [2, 16], strides = [1, 1]} : vector<2x48xf32> to vector<2x16xf32>
    %40 = arith.addf %38, %39 : vector<2x16xf32>
    %41 = arith.negf %40 : vector<2x16xf32>
    %42 = math.exp %41 : vector<2x16xf32>
    %cst_23 = arith.constant 1.000000e+00 : f32
    %43 = vector.broadcast %cst_23 : f32 to vector<2x16xf32>
    %44 = arith.addf %43, %42 : vector<2x16xf32>
    %45 = arith.divf %43, %44 : vector<2x16xf32>
    %46 = vector.extract_strided_slice %10 {offsets = [0, 32], sizes = [2, 16], strides = [1, 1]} : vector<2x48xf32> to vector<2x16xf32>
    %47 = vector.extract_strided_slice %24 {offsets = [0, 32], sizes = [2, 16], strides = [1, 1]} : vector<2x48xf32> to vector<2x16xf32>
    %48 = arith.mulf %37, %47 : vector<2x16xf32>
    %49 = arith.addf %46, %48 : vector<2x16xf32>
    %50 = math.tanh %49 : vector<2x16xf32>
    %cst_24 = arith.constant 1.000000e+00 : f32
    %51 = vector.broadcast %cst_24 : f32 to vector<2x16xf32>
    %52 = arith.subf %51, %45 : vector<2x16xf32>
    %53 = arith.mulf %52, %50 : vector<2x16xf32>
    %54 = arith.mulf %45, %5 : vector<2x16xf32>
    %55 = arith.addf %53, %54 : vector<2x16xf32>
    %56 = vector.extract_strided_slice %13 {offsets = [0, 0], sizes = [2, 16], strides = [1, 1]} : vector<2x48xf32> to vector<2x16xf32>
    %57 = vector.extract_strided_slice %29 {offsets = [0, 0], sizes = [2, 16], strides = [1, 1]} : vector<2x48xf32> to vector<2x16xf32>
    %58 = arith.addf %56, %57 : vector<2x16xf32>
    %59 = arith.negf %58 : vector<2x16xf32>
    %60 = math.exp %59 : vector<2x16xf32>
    %cst_25 = arith.constant 1.000000e+00 : f32
    %61 = vector.broadcast %cst_25 : f32 to vector<2x16xf32>
    %62 = arith.addf %61, %60 : vector<2x16xf32>
    %63 = arith.divf %61, %62 : vector<2x16xf32>
    %64 = vector.extract_strided_slice %13 {offsets = [0, 16], sizes = [2, 16], strides = [1, 1]} : vector<2x48xf32> to vector<2x16xf32>
    %65 = vector.extract_strided_slice %29 {offsets = [0, 16], sizes = [2, 16], strides = [1, 1]} : vector<2x48xf32> to vector<2x16xf32>
    %66 = arith.addf %64, %65 : vector<2x16xf32>
    %67 = arith.negf %66 : vector<2x16xf32>
    %68 = math.exp %67 : vector<2x16xf32>
    %cst_26 = arith.constant 1.000000e+00 : f32
    %69 = vector.broadcast %cst_26 : f32 to vector<2x16xf32>
    %70 = arith.addf %69, %68 : vector<2x16xf32>
    %71 = arith.divf %69, %70 : vector<2x16xf32>
    %72 = vector.extract_strided_slice %13 {offsets = [0, 32], sizes = [2, 16], strides = [1, 1]} : vector<2x48xf32> to vector<2x16xf32>
    %73 = vector.extract_strided_slice %29 {offsets = [0, 32], sizes = [2, 16], strides = [1, 1]} : vector<2x48xf32> to vector<2x16xf32>
    %74 = arith.mulf %63, %73 : vector<2x16xf32>
    %75 = arith.addf %72, %74 : vector<2x16xf32>
    %76 = math.tanh %75 : vector<2x16xf32>
    %cst_27 = arith.constant 1.000000e+00 : f32
    %77 = vector.broadcast %cst_27 : f32 to vector<2x16xf32>
    %78 = arith.subf %77, %71 : vector<2x16xf32>
    %79 = arith.mulf %78, %76 : vector<2x16xf32>
    %80 = arith.mulf %71, %7 : vector<2x16xf32>
    %81 = arith.addf %79, %80 : vector<2x16xf32>
    %82 = vector.broadcast %16 : vector<2x1xf32> to vector<2x16xf32>
    %83 = arith.mulf %82, %55 : vector<2x16xf32>
    %c0_28 = arith.constant 0 : index
    %84 = arith.index_cast %arg0 : i32 to index
    %c0_29 = arith.constant 0 : index
    %c0_30 = arith.constant 0 : index
    %85 = vector.load %arg8[%c0_28, %84, %c0_29, %c0_30] : memref<2x10x2x16xf32, #tpu.memory_space<vmem>>, vector<1x1x2x16xf32>
    %86 = vector.shape_cast %85 : vector<1x1x2x16xf32> to vector<2x16xf32>
    %87 = vector.shape_cast %83 : vector<2x16xf32> to vector<1x1x2x16xf32>
    tpu.vector_store %arg8[%c0_28, %84, %c0_29, %c0_30], %87 {strides = array<i32>} : memref<2x10x2x16xf32, #tpu.memory_space<vmem>>, vector<1x1x2x16xf32>,
    %88 = vector.broadcast %19 : vector<2x1xf32> to vector<2x16xf32>
    %89 = arith.mulf %88, %81 : vector<2x16xf32>
    %c1_31 = arith.constant 1 : index
    %90 = arith.index_cast %0 : i32 to index
    %c0_32 = arith.constant 0 : index
    %c0_33 = arith.constant 0 : index
    %91 = vector.load %arg8[%c1_31, %90, %c0_32, %c0_33] : memref<2x10x2x16xf32, #tpu.memory_space<vmem>>, vector<1x1x2x16xf32>
    %92 = vector.shape_cast %91 : vector<1x1x2x16xf32> to vector<2x16xf32>
    %93 = vector.shape_cast %89 : vector<2x16xf32> to vector<1x1x2x16xf32>
    tpu.vector_store %arg8[%c1_31, %90, %c0_32, %c0_33], %93 {strides = array<i32>} : memref<2x10x2x16xf32, #tpu.memory_space<vmem>>, vector<1x1x2x16xf32>,
    %94 = vector.broadcast %16 : vector<2x1xf32> to vector<2x16xf32>
    %95 = arith.mulf %94, %55 : vector<2x16xf32>
    %cst_34 = arith.constant 1.000000e+00 : f32
    %96 = vector.broadcast %cst_34 : f32 to vector<2x1xf32>
    %97 = arith.subf %96, %16 : vector<2x1xf32>
    %98 = vector.broadcast %97 : vector<2x1xf32> to vector<2x16xf32>
    %99 = arith.mulf %98, %5 : vector<2x16xf32>
    %100 = arith.addf %95, %99 : vector<2x16xf32>
    %101 = vector.broadcast %19 : vector<2x1xf32> to vector<2x16xf32>
    %102 = arith.mulf %101, %81 : vector<2x16xf32>
    %cst_35 = arith.constant 1.000000e+00 : f32
    %103 = vector.broadcast %cst_35 : f32 to vector<2x1xf32>
    %104 = arith.subf %103, %19 : vector<2x1xf32>
    %105 = vector.broadcast %104 : vector<2x1xf32> to vector<2x16xf32>
    %106 = arith.mulf %105, %7 : vector<2x16xf32>
    %107 = arith.addf %102, %106 : vector<2x16xf32>
    %c0_36 = arith.constant 0 : index
    %c0_37 = arith.constant 0 : index
    %c0_38 = arith.constant 0 : index
    %108 = vector.load %arg10[%c0_36, %c0_37, %c0_38] : memref<2x2x16xf32, #tpu.memory_space<vmem>>, vector<1x2x16xf32>
    %109 = vector.shape_cast %108 : vector<1x2x16xf32> to vector<2x16xf32>
    %110 = vector.shape_cast %100 : vector<2x16xf32> to vector<1x2x16xf32>
    tpu.vector_store %arg10[%c0_36, %c0_37, %c0_38], %110 {strides = array<i32>} : memref<2x2x16xf32, #tpu.memory_space<vmem>>, vector<1x2x16xf32>,
    %c1_39 = arith.constant 1 : index
    %c0_40 = arith.constant 0 : index
    %c0_41 = arith.constant 0 : index
    %111 = vector.load %arg10[%c1_39, %c0_40, %c0_41] : memref<2x2x16xf32, #tpu.memory_space<vmem>>, vector<1x2x16xf32>
    %112 = vector.shape_cast %111 : vector<1x2x16xf32> to vector<2x16xf32>
    %113 = vector.shape_cast %107 : vector<2x16xf32> to vector<1x2x16xf32>
    tpu.vector_store %arg10[%c1_39, %c0_40, %c0_41], %113 {strides = array<i32>} : memref<2x2x16xf32, #tpu.memory_space<vmem>>, vector<1x2x16xf32>,
    %c9_i32_42 = arith.constant 9 : i32
    %114 = arith.cmpi eq, %arg0, %c9_i32_42 : i32
    %115 = arith.extui %114 : i1 to i32
    %c0_i32_43 = arith.constant 0 : i32
    %116 = arith.cmpi ne, %115, %c0_i32_43 : i32
    scf.if %116 {
      %c0_44 = arith.constant 0 : index
      %c0_45 = arith.constant 0 : index
      %c0_46 = arith.constant 0 : index
      %117 = vector.load %arg9[%c0_44, %c0_45, %c0_46] : memref<2x2x16xf32, #tpu.memory_space<vmem>>, vector<1x2x16xf32>
      %118 = vector.shape_cast %117 : vector<1x2x16xf32> to vector<2x16xf32>
      %119 = vector.shape_cast %100 : vector<2x16xf32> to vector<1x2x16xf32>
      tpu.vector_store %arg9[%c0_44, %c0_45, %c0_46], %119 {strides = array<i32>} : memref<2x2x16xf32, #tpu.memory_space<vmem>>, vector<1x2x16xf32>,
      %c1_47 = arith.constant 1 : index
      %c0_48 = arith.constant 0 : index
      %c0_49 = arith.constant 0 : index
      %120 = vector.load %arg9[%c1_47, %c0_48, %c0_49] : memref<2x2x16xf32, #tpu.memory_space<vmem>>, vector<1x2x16xf32>
      %121 = vector.shape_cast %120 : vector<1x2x16xf32> to vector<2x16xf32>
      %122 = vector.shape_cast %107 : vector<2x16xf32> to vector<1x2x16xf32>
      tpu.vector_store %arg9[%c1_47, %c0_48, %c0_49], %122 {strides = array<i32>} : memref<2x2x16xf32, #tpu.memory_space<vmem>>, vector<1x2x16xf32>,
    } else {
    }
    return
  }
  func.func @transform_0(%arg0: i32) -> (i32, i32, i32) {
    %c0_i32 = arith.constant 0 : i32
    %c0_i32_0 = arith.constant 0 : i32
    %c0_i32_1 = arith.constant 0 : i32
    %c0_i32_2 = arith.constant 0 : i32
    return %c0_i32, %c0_i32_0, %c0_i32_1 : i32, i32, i32
  }
  func.func @transform_1(%arg0: i32) -> (i32, i32, i32) {
    %c0_i32 = arith.constant 0 : i32
    %c0_i32_0 = arith.constant 0 : i32
    %c0_i32_1 = arith.constant 0 : i32
    %c0_i32_2 = arith.constant 0 : i32
    return %c0_i32, %c0_i32_0, %c0_i32_1 : i32, i32, i32
  }
  func.func @transform_2(%arg0: i32) -> (i32, i32, i32) {
    %c0_i32 = arith.constant 0 : i32
    %c0_i32_0 = arith.constant 0 : i32
    %c0_i32_1 = arith.constant 0 : i32
    %c0_i32_2 = arith.constant 0 : i32
    return %c0_i32, %c0_i32_0, %c0_i32_1 : i32, i32, i32
  }
  func.func @transform_3(%arg0: i32) -> (i32, i32) {
    %c0_i32 = arith.constant 0 : i32
    %c0_i32_0 = arith.constant 0 : i32
    %c0_i32_1 = arith.constant 0 : i32
    return %c0_i32, %c0_i32_0 : i32, i32
  }
  func.func @transform_4(%arg0: i32) -> (i32, i32) {
    %c0_i32 = arith.constant 0 : i32
    %c0_i32_0 = arith.constant 0 : i32
    %c0_i32_1 = arith.constant 0 : i32
    return %c0_i32, %c0_i32_0 : i32, i32
  }
  func.func @transform_5(%arg0: i32) -> (i32, i32) {
    %c0_i32 = arith.constant 0 : i32
    %c0_i32_0 = arith.constant 0 : i32
    %c0_i32_1 = arith.constant 0 : i32
    return %c0_i32, %c0_i32_0 : i32, i32
  }
  func.func @transform_6(%arg0: i32) -> (i32, i32) {
    %c0_i32 = arith.constant 0 : i32
    %c0_i32_0 = arith.constant 0 : i32
    %c0_i32_1 = arith.constant 0 : i32
    return %c0_i32, %c0_i32_0 : i32, i32
  }
  func.func @transform_7(%arg0: i32) -> (i32, i32, i32, i32) {
    %c0_i32 = arith.constant 0 : i32
    %c0_i32_0 = arith.constant 0 : i32
    %c0_i32_1 = arith.constant 0 : i32
    %c0_i32_2 = arith.constant 0 : i32
    %c0_i32_3 = arith.constant 0 : i32
    return %c0_i32, %c0_i32_0, %c0_i32_1, %c0_i32_2 : i32, i32, i32, i32
  }
  func.func @transform_8(%arg0: i32) -> (i32, i32, i32) {
    %c0_i32 = arith.constant 0 : i32
    %c0_i32_0 = arith.constant 0 : i32
    %c0_i32_1 = arith.constant 0 : i32
    %c0_i32_2 = arith.constant 0 : i32
    return %c0_i32, %c0_i32_0, %c0_i32_1 : i32, i32, i32
  }
}

module attributes {stable_mosaic.version = 11 : i64} {
  func.func @decoder_kernel(%arg0: i32, %arg1: memref<7x2x96xf32, #tpu.memory_space<vmem>>, %arg2: memref<2x2x32xf32, #tpu.memory_space<vmem>>, %arg3: memref<2x10x32xf32, #tpu.memory_space<vmem>>, %arg4: memref<2x32x96xf32, #tpu.memory_space<vmem>>, %arg5: memref<2x1x96xf32, #tpu.memory_space<vmem>>, %arg6: memref<1x32x96xf32, #tpu.memory_space<vmem>>, %arg7: memref<1x1x96xf32, #tpu.memory_space<vmem>>, %arg8: memref<32x32xf32, #tpu.memory_space<vmem>>, %arg9: memref<32x32xf32, #tpu.memory_space<vmem>>, %arg10: memref<32x32xf32, #tpu.memory_space<vmem>>, %arg11: memref<7x2x32xf32, #tpu.memory_space<vmem>>, %arg12: memref<2x2x32xf32, #tpu.memory_space<vmem>>) attributes {dimension_semantics = [#tpu.dimension_semantics<arbitrary>], iteration_bounds = array<i64: 7>, scalar_prefetch = 0 : i64, scratch_operands = 1 : i64, tpu.core_type = #tpu.core_type<tc>, window_params = [{pipeline_mode = #tpu.pipeline_mode<synchronous>, transform_indices = @transform_0, window_bounds = array<i64: 7, 2, 96>}, {pipeline_mode = #tpu.pipeline_mode<synchronous>, transform_indices = @transform_1, window_bounds = array<i64: 2, 2, 32>}, {pipeline_mode = #tpu.pipeline_mode<synchronous>, transform_indices = @transform_2, window_bounds = array<i64: 2, 10, 32>}, {pipeline_mode = #tpu.pipeline_mode<synchronous>, transform_indices = @transform_3, window_bounds = array<i64: 2, 32, 96>}, {pipeline_mode = #tpu.pipeline_mode<synchronous>, transform_indices = @transform_4, window_bounds = array<i64: 2, 1, 96>}, {pipeline_mode = #tpu.pipeline_mode<synchronous>, transform_indices = @transform_5, window_bounds = array<i64: 1, 32, 96>}, {pipeline_mode = #tpu.pipeline_mode<synchronous>, transform_indices = @transform_6, window_bounds = array<i64: 1, 1, 96>}, {pipeline_mode = #tpu.pipeline_mode<synchronous>, transform_indices = @transform_7, window_bounds = array<i64: 32, 32>}, {pipeline_mode = #tpu.pipeline_mode<synchronous>, transform_indices = @transform_8, window_bounds = array<i64: 32, 32>}, {pipeline_mode = #tpu.pipeline_mode<synchronous>, transform_indices = @transform_9, window_bounds = array<i64: 32, 32>}, {pipeline_mode = #tpu.pipeline_mode<synchronous>, transform_indices = @transform_10, window_bounds = array<i64: 7, 2, 32>}]} {
    %c0_i32 = arith.constant 0 : i32
    %0 = arith.cmpi eq, %arg0, %c0_i32 : i32
    %1 = arith.extui %0 : i1 to i32
    %c0_i32_0 = arith.constant 0 : i32
    %2 = arith.cmpi ne, %1, %c0_i32_0 : i32
    scf.if %2 {
      %c0_57 = arith.constant 0 : index
      %c0_58 = arith.constant 0 : index
      %c0_59 = arith.constant 0 : index
      %119 = vector.load %arg2[%c0_57, %c0_58, %c0_59] : memref<2x2x32xf32, #tpu.memory_space<vmem>>, vector<2x2x32xf32>
      %c0_60 = arith.constant 0 : index
      %c0_61 = arith.constant 0 : index
      %c0_62 = arith.constant 0 : index
      %120 = vector.load %arg12[%c0_60, %c0_61, %c0_62] : memref<2x2x32xf32, #tpu.memory_space<vmem>>, vector<2x2x32xf32>
      tpu.vector_store %arg12[%c0_60, %c0_61, %c0_62], %119 {strides = array<i32>} : memref<2x2x32xf32, #tpu.memory_space<vmem>>, vector<2x2x32xf32>,
    } else {
    }
    %3 = arith.index_cast %arg0 : i32 to index
    %c0 = arith.constant 0 : index
    %c0_1 = arith.constant 0 : index
    %4 = vector.load %arg1[%3, %c0, %c0_1] : memref<7x2x96xf32, #tpu.memory_space<vmem>>, vector<1x2x96xf32>
    %5 = vector.shape_cast %4 : vector<1x2x96xf32> to vector<2x96xf32>
    %c0_2 = arith.constant 0 : index
    %c0_3 = arith.constant 0 : index
    %c0_4 = arith.constant 0 : index
    %6 = vector.load %arg12[%c0_2, %c0_3, %c0_4] : memref<2x2x32xf32, #tpu.memory_space<vmem>>, vector<1x2x32xf32>
    %7 = vector.shape_cast %6 : vector<1x2x32xf32> to vector<2x32xf32>
    %c0_5 = arith.constant 0 : index
    %c0_6 = arith.constant 0 : index
    %c0_7 = arith.constant 0 : index
    %8 = vector.load %arg4[%c0_5, %c0_6, %c0_7] : memref<2x32x96xf32, #tpu.memory_space<vmem>>, vector<1x32x96xf32>
    %9 = vector.shape_cast %8 : vector<1x32x96xf32> to vector<32x96xf32>
    %cst = arith.constant dense<0.000000e+00> : vector<2x96xf32>
    %10 = tpu.matmul %7, %9, %cst {dimension_numbers = #tpu.dot_dimension_numbers<[1], [0], [0], [1], [0, 0, 1, 1], [], []>} : vector<2x32xf32>, vector<32x96xf32>, vector<2x96xf32> -> vector<2x96xf32>
    %c0_8 = arith.constant 0 : index
    %c0_9 = arith.constant 0 : index
    %c0_10 = arith.constant 0 : index
    %11 = vector.load %arg5[%c0_8, %c0_9, %c0_10] : memref<2x1x96xf32, #tpu.memory_space<vmem>>, vector<1x1x96xf32>
    %12 = vector.shape_cast %11 : vector<1x1x96xf32> to vector<1x96xf32>
    %13 = vector.broadcast %12 : vector<1x96xf32> to vector<2x96xf32>
    %14 = arith.addf %10, %13 : vector<2x96xf32>
    %15 = vector.extract_strided_slice %5 {offsets = [0, 0], sizes = [2, 32], strides = [1, 1]} : vector<2x96xf32> to vector<2x32xf32>
    %16 = vector.extract_strided_slice %14 {offsets = [0, 0], sizes = [2, 32], strides = [1, 1]} : vector<2x96xf32> to vector<2x32xf32>
    %17 = arith.addf %15, %16 : vector<2x32xf32>
    %18 = arith.negf %17 : vector<2x32xf32>
    %19 = math.exp %18 : vector<2x32xf32>
    %cst_11 = arith.constant 1.000000e+00 : f32
    %20 = vector.broadcast %cst_11 : f32 to vector<2x32xf32>
    %21 = arith.addf %20, %19 : vector<2x32xf32>
    %22 = arith.divf %20, %21 : vector<2x32xf32>
    %23 = vector.extract_strided_slice %5 {offsets = [0, 32], sizes = [2, 32], strides = [1, 1]} : vector<2x96xf32> to vector<2x32xf32>
    %24 = vector.extract_strided_slice %14 {offsets = [0, 32], sizes = [2, 32], strides = [1, 1]} : vector<2x96xf32> to vector<2x32xf32>
    %25 = arith.addf %23, %24 : vector<2x32xf32>
    %26 = arith.negf %25 : vector<2x32xf32>
    %27 = math.exp %26 : vector<2x32xf32>
    %cst_12 = arith.constant 1.000000e+00 : f32
    %28 = vector.broadcast %cst_12 : f32 to vector<2x32xf32>
    %29 = arith.addf %28, %27 : vector<2x32xf32>
    %30 = arith.divf %28, %29 : vector<2x32xf32>
    %31 = vector.extract_strided_slice %5 {offsets = [0, 64], sizes = [2, 32], strides = [1, 1]} : vector<2x96xf32> to vector<2x32xf32>
    %32 = vector.extract_strided_slice %14 {offsets = [0, 64], sizes = [2, 32], strides = [1, 1]} : vector<2x96xf32> to vector<2x32xf32>
    %33 = arith.mulf %22, %32 : vector<2x32xf32>
    %34 = arith.addf %31, %33 : vector<2x32xf32>
    %35 = math.tanh %34 : vector<2x32xf32>
    %cst_13 = arith.constant 1.000000e+00 : f32
    %36 = vector.broadcast %cst_13 : f32 to vector<2x32xf32>
    %37 = arith.subf %36, %30 : vector<2x32xf32>
    %38 = arith.mulf %37, %35 : vector<2x32xf32>
    %39 = arith.mulf %30, %7 : vector<2x32xf32>
    %40 = arith.addf %38, %39 : vector<2x32xf32>
    %c0_14 = arith.constant 0 : index
    %c0_15 = arith.constant 0 : index
    %c0_16 = arith.constant 0 : index
    %41 = vector.load %arg12[%c0_14, %c0_15, %c0_16] : memref<2x2x32xf32, #tpu.memory_space<vmem>>, vector<1x2x32xf32>
    %42 = vector.shape_cast %41 : vector<1x2x32xf32> to vector<2x32xf32>
    %43 = vector.shape_cast %40 : vector<2x32xf32> to vector<1x2x32xf32>
    tpu.vector_store %arg12[%c0_14, %c0_15, %c0_16], %43 {strides = array<i32>} : memref<2x2x32xf32, #tpu.memory_space<vmem>>, vector<1x2x32xf32>,
    %c1 = arith.constant 1 : index
    %c0_17 = arith.constant 0 : index
    %c0_18 = arith.constant 0 : index
    %44 = vector.load %arg12[%c1, %c0_17, %c0_18] : memref<2x2x32xf32, #tpu.memory_space<vmem>>, vector<1x2x32xf32>
    %45 = vector.shape_cast %44 : vector<1x2x32xf32> to vector<2x32xf32>
    %c0_19 = arith.constant 0 : index
    %c0_20 = arith.constant 0 : index
    %c0_21 = arith.constant 0 : index
    %46 = vector.load %arg6[%c0_19, %c0_20, %c0_21] : memref<1x32x96xf32, #tpu.memory_space<vmem>>, vector<1x32x96xf32>
    %47 = vector.shape_cast %46 : vector<1x32x96xf32> to vector<32x96xf32>
    %cst_22 = arith.constant dense<0.000000e+00> : vector<2x96xf32>
    %48 = tpu.matmul %40, %47, %cst_22 {dimension_numbers = #tpu.dot_dimension_numbers<[1], [0], [0], [1], [0, 0, 1, 1], [], []>} : vector<2x32xf32>, vector<32x96xf32>, vector<2x96xf32> -> vector<2x96xf32>
    %c0_23 = arith.constant 0 : index
    %c0_24 = arith.constant 0 : index
    %c0_25 = arith.constant 0 : index
    %49 = vector.load %arg7[%c0_23, %c0_24, %c0_25] : memref<1x1x96xf32, #tpu.memory_space<vmem>>, vector<1x1x96xf32>
    %50 = vector.shape_cast %49 : vector<1x1x96xf32> to vector<1x96xf32>
    %51 = vector.broadcast %50 : vector<1x96xf32> to vector<2x96xf32>
    %52 = arith.addf %48, %51 : vector<2x96xf32>
    %c1_26 = arith.constant 1 : index
    %c0_27 = arith.constant 0 : index
    %c0_28 = arith.constant 0 : index
    %53 = vector.load %arg4[%c1_26, %c0_27, %c0_28] : memref<2x32x96xf32, #tpu.memory_space<vmem>>, vector<1x32x96xf32>
    %54 = vector.shape_cast %53 : vector<1x32x96xf32> to vector<32x96xf32>
    %cst_29 = arith.constant dense<0.000000e+00> : vector<2x96xf32>
    %55 = tpu.matmul %45, %54, %cst_29 {dimension_numbers = #tpu.dot_dimension_numbers<[1], [0], [0], [1], [0, 0, 1, 1], [], []>} : vector<2x32xf32>, vector<32x96xf32>, vector<2x96xf32> -> vector<2x96xf32>
    %c1_30 = arith.constant 1 : index
    %c0_31 = arith.constant 0 : index
    %c0_32 = arith.constant 0 : index
    %56 = vector.load %arg5[%c1_30, %c0_31, %c0_32] : memref<2x1x96xf32, #tpu.memory_space<vmem>>, vector<1x1x96xf32>
    %57 = vector.shape_cast %56 : vector<1x1x96xf32> to vector<1x96xf32>
    %58 = vector.broadcast %57 : vector<1x96xf32> to vector<2x96xf32>
    %59 = arith.addf %55, %58 : vector<2x96xf32>
    %60 = vector.extract_strided_slice %52 {offsets = [0, 0], sizes = [2, 32], strides = [1, 1]} : vector<2x96xf32> to vector<2x32xf32>
    %61 = vector.extract_strided_slice %59 {offsets = [0, 0], sizes = [2, 32], strides = [1, 1]} : vector<2x96xf32> to vector<2x32xf32>
    %62 = arith.addf %60, %61 : vector<2x32xf32>
    %63 = arith.negf %62 : vector<2x32xf32>
    %64 = math.exp %63 : vector<2x32xf32>
    %cst_33 = arith.constant 1.000000e+00 : f32
    %65 = vector.broadcast %cst_33 : f32 to vector<2x32xf32>
    %66 = arith.addf %65, %64 : vector<2x32xf32>
    %67 = arith.divf %65, %66 : vector<2x32xf32>
    %68 = vector.extract_strided_slice %52 {offsets = [0, 32], sizes = [2, 32], strides = [1, 1]} : vector<2x96xf32> to vector<2x32xf32>
    %69 = vector.extract_strided_slice %59 {offsets = [0, 32], sizes = [2, 32], strides = [1, 1]} : vector<2x96xf32> to vector<2x32xf32>
    %70 = arith.addf %68, %69 : vector<2x32xf32>
    %71 = arith.negf %70 : vector<2x32xf32>
    %72 = math.exp %71 : vector<2x32xf32>
    %cst_34 = arith.constant 1.000000e+00 : f32
    %73 = vector.broadcast %cst_34 : f32 to vector<2x32xf32>
    %74 = arith.addf %73, %72 : vector<2x32xf32>
    %75 = arith.divf %73, %74 : vector<2x32xf32>
    %76 = vector.extract_strided_slice %52 {offsets = [0, 64], sizes = [2, 32], strides = [1, 1]} : vector<2x96xf32> to vector<2x32xf32>
    %77 = vector.extract_strided_slice %59 {offsets = [0, 64], sizes = [2, 32], strides = [1, 1]} : vector<2x96xf32> to vector<2x32xf32>
    %78 = arith.mulf %67, %77 : vector<2x32xf32>
    %79 = arith.addf %76, %78 : vector<2x32xf32>
    %80 = math.tanh %79 : vector<2x32xf32>
    %cst_35 = arith.constant 1.000000e+00 : f32
    %81 = vector.broadcast %cst_35 : f32 to vector<2x32xf32>
    %82 = arith.subf %81, %75 : vector<2x32xf32>
    %83 = arith.mulf %82, %80 : vector<2x32xf32>
    %84 = arith.mulf %75, %45 : vector<2x32xf32>
    %85 = arith.addf %83, %84 : vector<2x32xf32>
    %c1_36 = arith.constant 1 : index
    %c0_37 = arith.constant 0 : index
    %c0_38 = arith.constant 0 : index
    %86 = vector.load %arg12[%c1_36, %c0_37, %c0_38] : memref<2x2x32xf32, #tpu.memory_space<vmem>>, vector<1x2x32xf32>
    %87 = vector.shape_cast %86 : vector<1x2x32xf32> to vector<2x32xf32>
    %88 = vector.shape_cast %85 : vector<2x32xf32> to vector<1x2x32xf32>
    tpu.vector_store %arg12[%c1_36, %c0_37, %c0_38], %88 {strides = array<i32>} : memref<2x2x32xf32, #tpu.memory_space<vmem>>, vector<1x2x32xf32>,
    %c0_39 = arith.constant 0 : index
    %c0_40 = arith.constant 0 : index
    %c0_41 = arith.constant 0 : index
    %89 = vector.load %arg3[%c0_39, %c0_40, %c0_41] : memref<2x10x32xf32, #tpu.memory_space<vmem>>, vector<2x10x32xf32>
    %c0_42 = arith.constant 0 : index
    %c0_43 = arith.constant 0 : index
    %90 = vector.load %arg8[%c0_42, %c0_43] : memref<32x32xf32, #tpu.memory_space<vmem>>, vector<32x32xf32>
    %cst_44 = arith.constant dense<0.000000e+00> : vector<2x32xf32>
    %91 = tpu.matmul %85, %90, %cst_44 {dimension_numbers = #tpu.dot_dimension_numbers<[1], [0], [0], [1], [0, 0, 1, 1], [], []>} : vector<2x32xf32>, vector<32x32xf32>, vector<2x32xf32> -> vector<2x32xf32>
    %92 = vector.shape_cast %91 : vector<2x32xf32> to vector<2x1x32xf32>
    %93 = vector.broadcast %92 : vector<2x1x32xf32> to vector<2x10x32xf32>
    %94 = arith.mulf %89, %93 : vector<2x10x32xf32>
    %cst_45 = arith.constant dense<0.000000e+00> : vector<2x10xf32>
    %95 = vector.multi_reduction <add>, %94, %cst_45 [2] : vector<2x10x32xf32> to vector<2x10xf32>
    %cst_46 = arith.constant dense<0xFF800000> : vector<2xf32>
    %96 = vector.multi_reduction <maximumf>, %95, %cst_46 [1] : vector<2x10xf32> to vector<2xf32>
    %97 = vector.shape_cast %96 : vector<2xf32> to vector<2x1xf32>
    %98 = vector.broadcast %97 : vector<2x1xf32> to vector<2x10xf32>
    %99 = arith.subf %95, %98 : vector<2x10xf32>
    %100 = math.exp %99 : vector<2x10xf32>
    %cst_47 = arith.constant dense<0.000000e+00> : vector<2xf32>
    %101 = vector.multi_reduction <add>, %100, %cst_47 [1] : vector<2x10xf32> to vector<2xf32>
    %102 = vector.shape_cast %101 : vector<2xf32> to vector<2x1xf32>
    %103 = vector.broadcast %102 : vector<2x1xf32> to vector<2x10xf32>
    %104 = arith.divf %100, %103 : vector<2x10xf32>
    %105 = vector.shape_cast %104 : vector<2x10xf32> to vector<2x10x1xf32>
    %106 = vector.broadcast %105 : vector<2x10x1xf32> to vector<2x10x32xf32>
    %107 = arith.mulf %106, %89 : vector<2x10x32xf32>
    %cst_48 = arith.constant dense<0.000000e+00> : vector<2x32xf32>
    %108 = vector.multi_reduction <add>, %107, %cst_48 [1] : vector<2x10x32xf32> to vector<2x32xf32>
    %c0_49 = arith.constant 0 : index
    %c0_50 = arith.constant 0 : index
    %109 = vector.load %arg9[%c0_49, %c0_50] : memref<32x32xf32, #tpu.memory_space<vmem>>, vector<32x32xf32>
    %cst_51 = arith.constant dense<0.000000e+00> : vector<2x32xf32>
    %110 = tpu.matmul %108, %109, %cst_51 {dimension_numbers = #tpu.dot_dimension_numbers<[1], [0], [0], [1], [0, 0, 1, 1], [], []>} : vector<2x32xf32>, vector<32x32xf32>, vector<2x32xf32> -> vector<2x32xf32>
    %c0_52 = arith.constant 0 : index
    %c0_53 = arith.constant 0 : index
    %111 = vector.load %arg10[%c0_52, %c0_53] : memref<32x32xf32, #tpu.memory_space<vmem>>, vector<32x32xf32>
    %cst_54 = arith.constant dense<0.000000e+00> : vector<2x32xf32>
    %112 = tpu.matmul %85, %111, %cst_54 {dimension_numbers = #tpu.dot_dimension_numbers<[1], [0], [0], [1], [0, 0, 1, 1], [], []>} : vector<2x32xf32>, vector<32x32xf32>, vector<2x32xf32> -> vector<2x32xf32>
    %113 = arith.addf %110, %112 : vector<2x32xf32>
    %114 = math.tanh %113 : vector<2x32xf32>
    %115 = arith.index_cast %arg0 : i32 to index
    %c0_55 = arith.constant 0 : index
    %c0_56 = arith.constant 0 : index
    %116 = vector.load %arg11[%115, %c0_55, %c0_56] : memref<7x2x32xf32, #tpu.memory_space<vmem>>, vector<1x2x32xf32>
    %117 = vector.shape_cast %116 : vector<1x2x32xf32> to vector<2x32xf32>
    %118 = vector.shape_cast %114 : vector<2x32xf32> to vector<1x2x32xf32>
    tpu.vector_store %arg11[%115, %c0_55, %c0_56], %118 {strides = array<i32>} : memref<7x2x32xf32, #tpu.memory_space<vmem>>, vector<1x2x32xf32>,
    return
  }
  func.func @transform_0(%arg0: i32) -> (i32, i32, i32) {
    %c0_i32 = arith.constant 0 : i32
    %c0_i32_0 = arith.constant 0 : i32
    %c0_i32_1 = arith.constant 0 : i32
    %c0_i32_2 = arith.constant 0 : i32
    return %c0_i32, %c0_i32_0, %c0_i32_1 : i32, i32, i32
  }
  func.func @transform_1(%arg0: i32) -> (i32, i32, i32) {
    %c0_i32 = arith.constant 0 : i32
    %c0_i32_0 = arith.constant 0 : i32
    %c0_i32_1 = arith.constant 0 : i32
    %c0_i32_2 = arith.constant 0 : i32
    return %c0_i32, %c0_i32_0, %c0_i32_1 : i32, i32, i32
  }
  func.func @transform_2(%arg0: i32) -> (i32, i32, i32) {
    %c0_i32 = arith.constant 0 : i32
    %c0_i32_0 = arith.constant 0 : i32
    %c0_i32_1 = arith.constant 0 : i32
    %c0_i32_2 = arith.constant 0 : i32
    return %c0_i32, %c0_i32_0, %c0_i32_1 : i32, i32, i32
  }
  func.func @transform_3(%arg0: i32) -> (i32, i32, i32) {
    %c0_i32 = arith.constant 0 : i32
    %c0_i32_0 = arith.constant 0 : i32
    %c0_i32_1 = arith.constant 0 : i32
    %c0_i32_2 = arith.constant 0 : i32
    return %c0_i32, %c0_i32_0, %c0_i32_1 : i32, i32, i32
  }
  func.func @transform_4(%arg0: i32) -> (i32, i32, i32) {
    %c0_i32 = arith.constant 0 : i32
    %c0_i32_0 = arith.constant 0 : i32
    %c0_i32_1 = arith.constant 0 : i32
    %c0_i32_2 = arith.constant 0 : i32
    return %c0_i32, %c0_i32_0, %c0_i32_1 : i32, i32, i32
  }
  func.func @transform_5(%arg0: i32) -> (i32, i32, i32) {
    %c0_i32 = arith.constant 0 : i32
    %c0_i32_0 = arith.constant 0 : i32
    %c0_i32_1 = arith.constant 0 : i32
    %c0_i32_2 = arith.constant 0 : i32
    return %c0_i32, %c0_i32_0, %c0_i32_1 : i32, i32, i32
  }
  func.func @transform_6(%arg0: i32) -> (i32, i32, i32) {
    %c0_i32 = arith.constant 0 : i32
    %c0_i32_0 = arith.constant 0 : i32
    %c0_i32_1 = arith.constant 0 : i32
    %c0_i32_2 = arith.constant 0 : i32
    return %c0_i32, %c0_i32_0, %c0_i32_1 : i32, i32, i32
  }
  func.func @transform_7(%arg0: i32) -> (i32, i32) {
    %c0_i32 = arith.constant 0 : i32
    %c0_i32_0 = arith.constant 0 : i32
    %c0_i32_1 = arith.constant 0 : i32
    return %c0_i32, %c0_i32_0 : i32, i32
  }
  func.func @transform_8(%arg0: i32) -> (i32, i32) {
    %c0_i32 = arith.constant 0 : i32
    %c0_i32_0 = arith.constant 0 : i32
    %c0_i32_1 = arith.constant 0 : i32
    return %c0_i32, %c0_i32_0 : i32, i32
  }
  func.func @transform_9(%arg0: i32) -> (i32, i32) {
    %c0_i32 = arith.constant 0 : i32
    %c0_i32_0 = arith.constant 0 : i32
    %c0_i32_1 = arith.constant 0 : i32
    return %c0_i32, %c0_i32_0 : i32, i32
  }
  func.func @transform_10(%arg0: i32) -> (i32, i32, i32) {
    %c0_i32 = arith.constant 0 : i32
    %c0_i32_0 = arith.constant 0 : i32
    %c0_i32_1 = arith.constant 0 : i32
    %c0_i32_2 = arith.constant 0 : i32
    return %c0_i32, %c0_i32_0, %c0_i32_1 : i32, i32, i32
  }
}

</mosaic_0001>

<bundles_post_ra>
// kernel: encoder_decoder_forward.3
= control target key start
LH: loop header
LB: loop body
LE: loop exit
PB: predicated region body
PF: predicated region fallthrough
CT: control target
= control target key end

     0   :  { %s744_s27 = smov 0   ;;  %s835_s0 = inlined_call_operand.vmem [shape: f32[10,2,48], index: 0, kind: input, shape index: {}]   ;;  %s836_s1 = inlined_call_operand.vmem [shape: f32[10,2,48], index: 1, kind: input, shape index: {}]   ;;  %s837_s2 = inlined_call_operand.vmem [shape: f32[10,2,1], index: 2, kind: input, shape index: {}]   ;;  %s838_s3 = inlined_call_operand.vmem [shape: f32[16,48], index: 3, kind: input, shape index: {}]   ;;  %s839_s4 = inlined_call_operand.vmem [shape: f32[16,48], index: 4, kind: input, shape index: {}]   ;;  %s840_s5 = inlined_call_operand.vmem [shape: f32[1,48], index: 5, kind: input, shape index: {}]   ;;  %s841_s6 = inlined_call_operand.vmem [shape: f32[1,48], index: 6, kind: input, shape index: {}]   ;;  %s842_s7 = inlined_call_operand.vmem [shape: f32[2,10,2,16], index: 7, kind: output, shape index: {0}]   ;;  %s843_s8 = inlined_call_operand.vmem [shape: f32[2,2,16], index: 8, kind: output, shape index: {1}]  }
   0x1 LB: > { %s750_s28 = sadd.s32 4294967295, %s689_s27   ;;  %p617_p0 = scmp.ge.s32.totalorder %s689_s27, 1  ;;  %s689_s27 = sphi %s744_s27, %s19_s27  }
   0x2   : > { %p245_p1 = scmp.lt.s32.totalorder %s689_s27, 11 }
   0x4   : > { %p246_p2 = pnand %p617_p0, %p245_p1 }
   0x5   : > { %s269_s29 = ssub.s32 (!%p246_p2), 9, %s750_s28  ;;  %p618_p3 = scmp.ne.s32.totalorder (!%p246_p2), %s750_s28, 0 }
   0x6   : > { %249 = sbr.rel (%p246_p2) target bundleno = 714 (0x2ca), region = 48 }
   0xb   : > { %273 = sbr.rel (%p618_p3) target bundleno = 18 (0x12), region = 52 }
  0x10   : > { %vm274_vm0 = vcmask 123904   ;;  %v691_v0 = vmov 0.0  }
  0x11   : > { %275 = vst.msk [vmem:[#allocation2] sm:$0x3] %vm274_vm0, %v691_v0  ;;  %276 = vst.msk [vmem:[#allocation2 + $0x2] sm:$0x3] %vm274_vm0, %v691_v0 }
  0x12 PF: > { %v291_v1 = vld [vmem:[%s838_s3 + $0x8] sm:$0xff]  ;;  %v692_v3 = vmov 0.0   ;;  %v290_v4 = vld [vmem:[%s838_s3] sm:$0xff]  ;;  %vm693_vm1 = vmmov 0   ;;  %vm299_vm2 = vcmask 130048   ;;  %v694_v8 = vmov 0  }
  0x13   : > { %v374_v2 = vld [vmem:[%s839_s4 + $0x8] sm:$0xff]  ;;  %639 = vmatprep.subr.mxu0 %v692_v3  ;;  %646 = vmatprep.subr.mxu1 %v692_v3  ;;  %v373_v6 = vld [vmem:[%s839_s4] sm:$0xff]  ;;  %s778_s18 = sshll.u32 %s750_s28, 1  ;;  %s695_s24 = smov 96   ;;  %vm524_vm3 = vcmask 123904  }
  0x14   : > { %640 = vmatpush3.msra.mxu0 %v291_v1  ;;  %643 = vmatprep.mubr.msk.f32.mxu0 %vm693_vm1, %v692_v3  ;;  %v621_v9 = vld [vmem:[%s840_s5] ss:$0 sm:$0xff]  ;;  %s286_s23 = scalar_lea.vmem %s837_s2, %s778_s18  ;;  %s789_s25 = sshll.u32 %s269_s29, 1 }
  0x15   : > { %641 = vmatprep.subr.mxu0 %v692_v3  ;;  %647 = vmatpush3.msra.mxu1 %v374_v2  ;;  %v623_v11 = vld [vmem:[%s841_s6] ss:$0 sm:$0xff]  ;;  %s288_s9 = scalar_lea.vmem %s837_s2, %s789_s25  ;;  %s696_s10 = smov 16  }
  0x16   : > { %642 = vmatpush3.msra.mxu0 %v290_v4  ;;  %648 = vmatprep.subr.mxu1 %v692_v3  ;;  %v287_v17 = vld [vmem:[%s286_s23] sm:$0x3]  ;;  %s281_s29 = scalar_lea.vmem %s835_s0, %s778_s18  ;;  %s284_s15 = scalar_lea.vmem %s836_s1, %s789_s25 }
  0x17   : > { %649 = vmatpush3.msra.mxu1 %v373_v6  ;;  %650 = vmatprep.mubr.msk.f32.mxu1 %vm693_vm1, %v692_v3  ;;  %v539_v18 = vsub.f32 1.0, %v287_v17  ;;  %v289_v19 = vld [vmem:[%s288_s9] sm:$0x3]  ;;  %s697_s16 = smov 32   ;;  %s698_s17 = smov 112  }
  0x18   : > { %v765_v5 = vld [vmem:[#allocation2] sm:$0x3]  ;;  %v770_v7 = vld [vmem:[#allocation2 + $0x2] sm:$0x3]  ;;  %669 = vset.pattern.permute.xlu0 %v694_v8  ;;  %670 = vset.pattern.permute.xlu1 %v694_v8  ;;  %v551_v36 = vsub.f32 1.0, %v289_v19  ;;  %s523_s21 = scalar_lea.vmem %s842_s7, %s778_s18  ;;  %p629_p4 = scmp.ne.s32.totalorder %s750_s28, 9 }
  0x19   : > { %644 = vmatmul.mubr.msk.f32.vlgmr.msra.gmra.mxu0 %vm299_vm2, %v765_v5  ;;  %651 = vmatmul.mubr.msk.f32.vlgmr.msra.gmra.mxu1 %vm299_vm2, %v770_v7  ;;  %v282_v20 = vld [vmem:[%s281_s29] sm:$0x3] }
  0x1a   : > { %v285_v22 = vld [vmem:[%s284_s15] sm:$0x3] }
  0xd9   : > { %v369_v10 = vpop.f32.mrf.mxu0  ;;  %v451_v14 = vpop.f32.mrf.mxu1 }
  0xda   : > { %v370_v12 = vadd.f32 %v621_v9, %v369_v10  ;;  %v452_v15 = vadd.f32 %v623_v11, %v451_v14 }
  0xdb   : > { %v645_v13 = vpop.f32.mrf.mxu0  ;;  %v652_v16 = vpop.f32.mrf.mxu1 }
  0xdc   : > { %463 = vrot.lane.b32.xlu0 %v370_v12, %s695_s24  ;;  %v455_v21 = vadd.f32 %v370_v12, %v282_v20  ;;  %v484_v24 = vadd.f32 %v452_v15, %v285_v22 }
  0xde   : > { %v625_v23 = vmul.f32 -1.442695, %v455_v21  ;;  %v626_v25 = vmul.f32 -1.442695, %v484_v24 }
  0xe0   : > { %492 = vrot.lane.b32.xlu0 %v452_v15, %s695_s24  ;;  %671 = vpow2.f32 %v625_v23  ;;  %s608_s24 = scalar_lea.vmem %s842_s7, %s789_s25 }
  0xe1   : > { %673 = vpow2.f32 %v626_v25 }
  0xe4   : > { %542 = vperm.xlu0 %669, %v539_v18  }
  0xe8   : > { %528 = vperm.xlu0 %669, %v289_v19  }
  0xec   : > { %479 = vrot.lane.b32.xlu0 %v765_v5, %s696_s10 }
  0xed   : > { %v672_v26 = vpop.eup %671 }
  0xee   : > { %v459_v27 = vadd.f32 1.0, %v672_v26  ;;  %v674_v28 = vpop.eup %673 }
  0xef   : > { %v488_v29 = vadd.f32 1.0, %v674_v28 }
  0xf0   : > { %508 = vrot.lane.b32.xlu0 %v770_v7, %s696_s10  ;;  %675 = vrcp.f32 %v459_v27 }
  0xf1   : > { %677 = vrcp.f32 %v488_v29 }
  0xfd   : > { %v676_v30 = vpop.eup %675 }
  0xfe   : > { %v678_v33 = vpop.eup %677  ;;  %v473_v50 = vsub.f32 1.0, %v676_v30 }
  0xff   : > { %v502_v56 = vsub.f32 1.0, %v678_v33 }
 0x14e   : > { %v464_v31 = vpop.permute.xlu0 %463 }
 0x14f   : > { %v466_v32 = vmul.f32 %v676_v30, %v464_v31 }
 0x151   : > { %468 = vrot.lane.b32.xlu1 %v466_v32, %s697_s16 }
 0x152   : > { %v493_v34 = vpop.permute.xlu0 %492 }
 0x153   : > { %v495_v35 = vmul.f32 %v678_v33, %v493_v34 }
 0x155   : > { %497 = vrot.lane.b32.xlu1 %v495_v35, %s697_s16 }
 0x159   : > { %554 = vperm.xlu1 %670, %v551_v36  }
 0x15d   : > { %515 = vperm.xlu1 %670, %v287_v17  }
 0x15f   : > { %v543_v45 = vpop.permute.xlu0 %542 }
 0x160   : > { %v545_v46 = vmul.f32 %v543_v45, %v765_v5 }
 0x163   : > { %v529_v47 = vpop.permute.xlu0 %528 }
 0x167   : > { %v480_v48 = vpop.permute.xlu0 %479 }
 0x168   : > { %v482_v52 = vmul.f32 %v676_v30, %v480_v48 }
 0x16b   : > { %v509_v54 = vpop.permute.xlu0 %508 }
 0x16c   : > { %v511_v58 = vmul.f32 %v678_v33, %v509_v54 }
 0x1c3   : > { %v469_v37 = vpop.permute.xlu1 %468 }
 0x1c4   : > { %v471_v38 = vadd.f32 %v469_v37, %v282_v20 }
 0x1c6   : > { %679 = vtanh.f32 %v471_v38 }
 0x1c7   : > { %v498_v39 = vpop.permute.xlu1 %497 }
 0x1c8   : > { %v500_v40 = vadd.f32 %v498_v39, %v285_v22 }
 0x1ca   : > { %681 = vtanh.f32 %v500_v40 }
 0x1d3   : > { %v680_v41 = vpop.eup %679 }
 0x1d4   : > { %475 = vrot.lane.b32.xlu1 %v680_v41, %s698_s17  ;;  %v555_v42 = vpop.permute.xlu1 %554 }
 0x1d5   : > { %v557_v43 = vmul.f32 %v555_v42, %v770_v7 }
 0x1d7   : > { %v682_v44 = vpop.eup %681  ;;  %559 = vrot.lane.b32.xlu0 %v557_v43, %s696_s10 }
 0x1d8   : > { %504 = vrot.lane.b32.xlu1 %v682_v44, %s698_s17  ;;  %v516_v49 = vpop.permute.xlu1 %515 }
 0x1dc   : > { %547 = vrot.lane.b32.xlu1 %v545_v46, %s696_s10 }
 0x246   : > { %v476_v51 = vpop.permute.xlu1 %475 }
 0x247   : > { %v478_v53 = vmul.f32 %v476_v51, %v473_v50 }
 0x249   : > { %v483_v55 = vadd.f32 %v482_v52, %v478_v53  ;;  %v560_v1 = vpop.permute.xlu0 %559 }
 0x24a   : > { %v505_v57 = vpop.permute.xlu1 %504 }
 0x24b   : > { %v507_v59 = vmul.f32 %v505_v57, %v502_v56  ;;  %v518_v60 = vmul.f32 %v516_v49, %v483_v55 }
 0x24d   : > { %v512_v61 = vadd.f32 %v511_v58, %v507_v59  ;;  %520 = vrot.lane.b32.xlu1 %v518_v60, %s698_s17 }
 0x24e   : > { %v548_v62 = vpop.permute.xlu1 %547 }
 0x24f   : > { %v550_v63 = vadd.f32 %v548_v62, %v518_v60  ;;  %v531_v0 = vmul.f32 %v529_v47, %v512_v61 }
 0x251   : > { %533 = vrot.lane.b32.xlu0 %v531_v0, %s698_s17  ;;  %564 = vrot.lane.b32.xlu1 %v550_v63, %s698_s17  ;;  %v562_v2 = vadd.f32 %v560_v1, %v531_v0 }
 0x255   : > { %569 = vrot.lane.b32.xlu0 %v562_v2, %s698_s17 }
 0x2bf   : > { %v521_v3 = vpop.permute.xlu1 %520 }
 0x2c0   : > { %525 = vst.msk [vmem:[%s523_s21] sm:$0x3] %vm524_vm3, %v521_v3 }
 0x2c3   : > { %v534_v4 = vpop.permute.xlu0 %533  ;;  %v565_v5 = vpop.permute.xlu1 %564 }
 0x2c4   : > { %628 = vst.msk [vmem:[%s608_s24 + $0x14] sm:$0x3] %vm524_vm3, %v534_v4  ;;  %567 = vst.msk [vmem:[#allocation2] sm:$0x3] %vm524_vm3, %v565_v5  ;;  %576 = sbr.rel (%p629_p4) target bundleno = 714 (0x2ca), region = 56 }
 0x2c7   : > { %v570_v6 = vpop.permute.xlu0 %569 }
 0x2c8   : > { %572 = vst.msk [vmem:[#allocation2 + $0x2] sm:$0x3] %vm524_vm3, %v570_v6 }
 0x2c9   : > { %577 = vst.msk [vmem:[%s843_s8] sm:$0x3] %vm524_vm3, %v565_v5  ;;  %630 = vst.msk [vmem:[%s843_s8 + $0x2] sm:$0x3] %vm524_vm3, %v570_v6 }
 0x2ca PF: > { %s19_s27 = sadd.s32 1, %s689_s27  }
 0x2cb   : > { %p16_p5 = scmp.ge.s32.totalorder %s19_s27, 12  }
 0x2cd   :  { %18 = sbr.rel (!%p16_p5) target bundleno = 1 (0x1), region = 95 }

// kernel: encoder_decoder_forward.5
= control target key start
LH: loop header
LB: loop body
LE: loop exit
PB: predicated region body
PF: predicated region fallthrough
CT: control target
= control target key end

     0   :  { %15 = vsyncpa [#allocation4], 0  ;;  %s1415_s13 = smov 0   ;;  %s1654_s0 = inlined_call_operand.vmem [shape: f32[7,2,96], index: 0, kind: input, shape index: {}]   ;;  %s1655_s1 = inlined_call_operand.vmem [shape: f32[2,2,32], index: 1, kind: input, shape index: {}]   ;;  %s1656_s2 = inlined_call_operand.vmem [shape: f32[2,10,32], index: 2, kind: input, shape index: {}]   ;;  %s1657_s3 = inlined_call_operand.vmem [shape: f32[2,32,96], index: 3, kind: input, shape index: {}]   ;;  %s1658_s4 = inlined_call_operand.vmem [shape: f32[2,1,96], index: 4, kind: input, shape index: {}]   ;;  %s1659_s5 = inlined_call_operand.vmem [shape: f32[1,32,96], index: 5, kind: input, shape index: {}]   ;;  %s1660_s6 = inlined_call_operand.vmem [shape: f32[1,1,96], index: 6, kind: input, shape index: {}]   ;;  %s1661_s7 = inlined_call_operand.vmem [shape: f32[32,32], index: 7, kind: input, shape index: {}]   ;;  %s1662_s8 = inlined_call_operand.vmem [shape: f32[32,32], index: 8, kind: input, shape index: {}]   ;;  %s1663_s9 = inlined_call_operand.vmem [shape: f32[32,32], index: 9, kind: input, shape index: {}]   ;;  %s1664_s10 = inlined_call_operand.hbm [shape: f32[7,2,32], index: 10, kind: output, shape index: {}]  }
   0x1 LB: > { %s1421_s14 = sadd.s32 4294967295, %s1349_s13   ;;  %p1145_p0 = scmp.ge.s32.totalorder %s1349_s13, 1  ;;  %s1349_s13 = sphi %s1415_s13, %s21_s13  }
   0x2   : > { %p298_p1 = scmp.lt.s32.totalorder %s1349_s13, 8 }
   0x4   : > { %p299_p2 = pnand %p1145_p0, %p298_p1 }
   0x5   : > { %p1146_p3 = scmp.ne.s32.totalorder (!%p299_p2), %s1421_s14, 0 }
   0x6   : > { %302 = sbr.rel (%p299_p2) target bundleno = 2478 (0x9ae), region = 60 }
   0xb   : > { %329 = sbr.rel (%p1146_p3) target bundleno = 18 (0x12), region = 64 }
  0x10   : > { %v330_v0 = vld [vmem:[%s1655_s1] sm:$0x3]  ;;  %vm332_vm0 = vcmask 254976   ;;  %v331_v1 = vld [vmem:[%s1655_s1 + $0x2] sm:$0x3] }
  0x11   : > { %333 = vst.msk [vmem:[#allocation2] sm:$0x3] %vm332_vm0, %v330_v0  ;;  %334 = vst.msk [vmem:[#allocation2 + $0x2] sm:$0x3] %vm332_vm0, %v331_v1 }
  0x12 PF: > { %v342_v2 = vld [vmem:[%s1657_s3 + $0x18] sm:$0xff]  ;;  %v1351_v3 = vmov 0.0   ;;  %v341_v4 = vld [vmem:[%s1657_s3 + $0x10] sm:$0xff]  ;;  %vm1352_vm1 = vmmov 0   ;;  %v340_v5 = vld [vmem:[%s1657_s3 + $0x8] sm:$0xff]  ;;  %vm350_vm2 = vcmask 261120  }
  0x13   : > { %1198 = vmatprep.subr.mxu0 %v1351_v3  ;;  %1206 = vmatprep.mubr.msk.f32.mxu0 %vm1352_vm1, %v1351_v3  ;;  %v339_v6 = vld [vmem:[%s1657_s3] sm:$0xff]  ;;  %s1353_s29 = smov 64   ;;  %s1147_s30 = sshll.u32 %s1421_s14, 1  ;;  %v1156_v22 = vld [vmem:[%s1657_s3 + $0x38] sm:$0xff]  ;;  %v1155_v23 = vld [vmem:[%s1657_s3 + $0x30] sm:$0xff]  ;;  %vm457_vm3 = vcmask 254976  }
  0x14   : > { %1199 = vmatpush3.msra.mxu0 %v342_v2  ;;  %1209 = vmatprep.subr.mxu1 %v1351_v3  ;;  %v1148_v8 = vld [vmem:[%s1658_s4] ss:$0 sm:$0xff]  ;;  %s336_s15 = scalar_lea.vmem %s1654_s0, %s1147_s30  ;;  %v464_v24 = vld [vmem:[%s1659_s5 + $0x18] sm:$0xff]  ;;  %v1154_v25 = vld [vmem:[%s1657_s3 + $0x28] sm:$0xff]  ;;  %s1354_s12 = smov 96   ;;  %vm808_vm4 = vcmask 130112  }
  0x15   : > { %1200 = vmatprep.subr.mxu0 %v1351_v3  ;;  %1217 = vmatprep.mubr.msk.f32.mxu1 %vm1352_vm1, %v1351_v3  ;;  %v337_v12 = vld [vmem:[%s336_s15] sm:$0x3]  ;;  %v463_v26 = vld [vmem:[%s1659_s5 + $0x10] sm:$0xff]  ;;  %v462_v29 = vld [vmem:[%s1659_s5 + $0x8] sm:$0xff]  ;;  %s1355_s17 = smov 32   ;;  %vm819_vm5 = vcmask 1041409  }
  0x16   : > { %1201 = vmatpush3.msra.mxu0 %v341_v4  ;;  %1210 = vmatpush3.msra.mxu1 %v464_v24  ;;  %v1153_v28 = vld [vmem:[%s1657_s3 + $0x20] sm:$0xff]  ;;  %v671_v56 = vld [vmem:[%s1661_s7 + $0x18] sm:$0xff]  ;;  %v670_v58 = vld [vmem:[%s1661_s7 + $0x10] sm:$0xff]  ;;  %vm822_vm6 = vcmask 74752   ;;  %p1268_p4 = scmp.eq.s32.totalorder %s1421_s14, 6  ;;  %s1101_s24 = scalar_lea.vmem [#allocation3], %s1147_s30 }
  0x17   : > { %1202 = vmatprep.subr.mxu0 %v1351_v3  ;;  %1211 = vmatprep.subr.mxu1 %v1351_v3  ;;  %v461_v31 = vld [vmem:[%s1659_s5] sm:$0xff]  ;;  %v954_v57 = vld [vmem:[%s1663_s9 + $0x18] sm:$0xff]  ;;  %v953_v59 = vld [vmem:[%s1663_s9 + $0x10] sm:$0xff] }
  0x18   : > { %1203 = vmatpush3.msra.mxu0 %v340_v5  ;;  %v338_v7 = vld [vmem:[#allocation2] sm:$0x3]  ;;  %1212 = vmatpush3.msra.mxu1 %v463_v26  ;;  %v460_v30 = vld [vmem:[#allocation2 + $0x2] sm:$0x3]  ;;  %v669_v60 = vld [vmem:[%s1661_s7 + $0x8] sm:$0xff] }
  0x19   : > { %1204 = vmatprep.subr.mxu0 %v1351_v3  ;;  %1213 = vmatprep.subr.mxu1 %v1351_v3  ;;  %v1158_v38 = vld [vmem:[%s1658_s4 + $0x1] ss:$0 sm:$0xff]  ;;  %v1151_v43 = vld [vmem:[%s1660_s6] ss:$0 sm:$0xff]  ;;  %v952_v61 = vld [vmem:[%s1663_s9 + $0x8] sm:$0xff] }
  0x1a   : > { %1205 = vmatpush3.msra.mxu0 %v339_v6  ;;  %1214 = vmatpush3.msra.mxu1 %v462_v29  ;;  %v668_v62 = vld [vmem:[%s1661_s7] sm:$0xff] }
  0x1b   : > { %1207 = vmatmul.mubr.msk.f32.vlgmr.msra.gmra.mxu0 %vm350_vm2, %v338_v7  ;;  %1220 = vmatprep.subr.mxu0 %v1351_v3  ;;  %v951_v63 = vld [vmem:[%s1663_s9] sm:$0xff] }
  0x1c   : > { %1228 = vmatprep.mubr.msk.f32.mxu0 %vm1352_vm1, %v1351_v3  ;;  %1221 = vmatpush3.msra.mxu0 %v1156_v22  ;;  %v1573_v24 = vld [vmem:[%s1656_s2] sm:$0xff] }
  0x1d   : > { %1222 = vmatprep.subr.mxu0 %v1351_v3  ;;  %1215 = vmatprep.subr.mxu1 %v1351_v3 }
  0x1e   : > { %1223 = vmatpush3.msra.mxu0 %v1155_v23  ;;  %1216 = vmatpush3.msra.mxu1 %v461_v31  ;;  %v1568_v23 = vld [vmem:[%s1656_s2 + $0x8] sm:$0x3] }
  0x1f   : > { %1224 = vmatprep.subr.mxu0 %v1351_v3  ;;  %1231 = vmatprep.subr.mxu1 %v1351_v3 }
  0x20   : > { %1225 = vmatpush3.msra.mxu0 %v1154_v25 }
  0x21   : > { %1226 = vmatprep.subr.mxu0 %v1351_v3 }
  0x22   : > { %1227 = vmatpush3.msra.mxu0 %v1153_v28 }
  0x23   : > { %1229 = vmatmul.mubr.msk.f32.vlgmr.msra.gmra.mxu0 %vm350_vm2, %v460_v30  ;;  %1242 = vmatprep.subr.mxu0 %v1351_v3 }
  0x24   : > { %1250 = vmatprep.mubr.msk.f32.mxu0 %vm1352_vm1, %v1351_v3  ;;  %1243 = vmatpush3.msra.mxu0 %v954_v57 }
  0x25   : > { %1244 = vmatprep.subr.mxu0 %v1351_v3 }
  0x26   : > { %1245 = vmatpush3.msra.mxu0 %v953_v59 }
  0x27   : > { %1246 = vmatprep.subr.mxu0 %v1351_v3 }
  0x28   : > { %1247 = vmatpush3.msra.mxu0 %v952_v61 }
  0x29   : > { %1248 = vmatprep.subr.mxu0 %v1351_v3 }
  0x2a   : > { %1249 = vmatpush3.msra.mxu0 %v951_v63 }
  0xdb   : > { %v420_v9 = vpop.f32.mrf.mxu0 }
  0xdc   : > { %v421_v10 = vadd.f32 %v1148_v8, %v420_v9  ;;  %v1356_v9 = vmov 1966171168  }
  0xdd   : > { %v1208_v11 = vpop.f32.mrf.mxu0 }
  0xde   : > { %432 = vrot.lane.b32.xlu0 %v421_v10, %s1353_s29  ;;  %v424_v13 = vadd.f32 %v421_v10, %v337_v12  ;;  %v746_v10 = vunpack.c.l.s4 %v1356_v9  ;;  %v748_v11 = vlaneseq }
  0xe0   : > { %v1150_v14 = vmul.f32 -1.442695, %v424_v13  ;;  %v1557_v13 = vshrl.u32 %v748_v11, 7 }
  0xe2   : > { %1289 = vpow2.f32 %v1150_v14 }
  0xe3   : > { %v626_v39 = vpop.f32.mrf.mxu0 }
  0xe4   : > { %v627_v40 = vadd.f32 %v1158_v38, %v626_v39  ;;  %v798_v38 = vand.u32 127, %v748_v11 }
  0xe5   : > { %v1230_v41 = vpop.f32.mrf.mxu0 }
  0xe6   : > { %v803_v39 = vadd.s32 4294967288, %v798_v38 }
  0xe8   : > { %v806_v41 = vsub.s32 %v803_v39, %v1557_v13 }
  0xef   : > { %v1290_v15 = vpop.eup %1289 }
  0xf0   : > { %v428_v16 = vadd.f32 1.0, %v1290_v15 }
  0xf2   : > { %1291 = vrcp.f32 %v428_v16 }
  0xff   : > { %v1292_v17 = vpop.eup %1291 }
 0x100   : > { %v442_v33 = vsub.f32 1.0, %v1292_v17 }
 0x150   : > { %v433_v18 = vpop.permute.xlu0 %432 }
 0x151   : > { %v435_v19 = vmul.f32 %v1292_v17, %v433_v18  ;;  %v1563_v18 = vsub.s32 0, %v1557_v13 }
 0x153   : > { %437 = vrot.lane.b32.xlu0 %v435_v19, %s1353_s29 }
 0x1c5   : > { %v438_v20 = vpop.permute.xlu0 %437 }
 0x1c6   : > { %v440_v21 = vadd.f32 %v438_v20, %v337_v12  ;;  %v747_v12 = vunpack.c.0.s8 %v746_v10 }
 0x1c8   : > { %1293 = vtanh.f32 %v440_v21  ;;  %v750_v14 = vsub.s32 %v747_v12, %v1557_v13 }
 0x1d5   : > { %v1294_v27 = vpop.eup %1293 }
 0x1d6   : > { %444 = vrot.lane.b32.xlu1 %v1294_v27, %s1354_s12  ;;  %v1579_v27 = vld [vmem:[%s1656_s2 + $0x10] sm:$0xff] }
 0x1da   : > { %448 = vrot.lane.b32.xlu1 %v338_v7, %s1355_s17 }
 0x1de   : > { %638 = vrot.lane.b32.xlu1 %v627_v40, %s1353_s29 }
 0x248   : > { %v445_v32 = vpop.permute.xlu1 %444 }
 0x249   : > { %v447_v35 = vmul.f32 %v445_v32, %v442_v33 }
 0x24c   : > { %v449_v34 = vpop.permute.xlu1 %448 }
 0x24d   : > { %v451_v36 = vmul.f32 %v1292_v17, %v449_v34  ;;  %v1590_v34 = vld [vmem:[%s1656_s2 + $0x18] sm:$0x3] }
 0x24f   : > { %v452_v37 = vadd.f32 %v451_v36, %v447_v35 }
 0x250   : > { %v639_v51 = vpop.permute.xlu1 %638 }
 0x251   : > { %454 = vrot.lane.b32.xlu0 %v452_v37, %s1354_s12 }
 0x2c3   : > { %v455_v42 = vpop.permute.xlu0 %454 }
 0x2c4   : > { %458 = vst.msk [vmem:[#allocation2] sm:$0x3] %vm457_vm3, %v455_v42  ;;  %1218 = vmatmul.mubr.msk.f32.vlgmr.msra.gmra.mxu1 %vm350_vm2, %v455_v42  ;;  %v801_v42 = vsub.s32 %v798_v38, %v1557_v13 }
 0x2c5   : > { %1239 = vmatprep.mubr.msk.f32.mxu1 %vm1352_vm1, %v1351_v3  ;;  %1232 = vmatpush3.msra.mxu1 %v671_v56 }
 0x2c6   : > { %1233 = vmatprep.subr.mxu1 %v1351_v3 }
 0x2c7   : > { %1234 = vmatpush3.msra.mxu1 %v670_v58 }
 0x2c8   : > { %1235 = vmatprep.subr.mxu1 %v1351_v3 }
 0x2c9   : > { %1236 = vmatpush3.msra.mxu1 %v669_v60 }
 0x2ca   : > { %1237 = vmatprep.subr.mxu1 %v1351_v3 }
 0x2cb   : > { %1238 = vmatpush3.msra.mxu1 %v668_v62 }
 0x2cc   : > { %1253 = vmatprep.subr.mxu1 %v1351_v3 }
 0x384   : > { %v540_v44 = vpop.f32.mrf.mxu1 }
 0x385   : > { %v541_v45 = vadd.f32 %v1151_v43, %v540_v44 }
 0x386   : > { %v1219_v46 = vpop.f32.mrf.mxu1 }
 0x387   : > { %v630_v47 = vadd.f32 %v627_v40, %v541_v45 }
 0x389   : > { %v1160_v48 = vmul.f32 -1.442695, %v630_v47 }
 0x38b   : > { %1295 = vpow2.f32 %v1160_v48 }
 0x398   : > { %v1296_v49 = vpop.eup %1295 }
 0x399   : > { %v634_v50 = vadd.f32 1.0, %v1296_v49 }
 0x39b   : > { %1297 = vrcp.f32 %v634_v50 }
 0x3a8   : > { %v1298_v52 = vpop.eup %1297 }
 0x3a9   : > { %v641_v53 = vmul.f32 %v1298_v52, %v639_v51  ;;  %v648_v2 = vsub.f32 1.0, %v1298_v52 }
 0x3ab   : > { %643 = vrot.lane.b32.xlu0 %v641_v53, %s1353_s29 }
 0x3af   : > { %654 = vrot.lane.b32.xlu0 %v460_v30, %s1355_s17 }
 0x41d   : > { %v644_v54 = vpop.permute.xlu0 %643 }
 0x41e   : > { %v646_v55 = vadd.f32 %v644_v54, %v541_v45  ;;  %v1357_v54 = vmov 0  }
 0x41f   : > { %1288 = vset.pattern.permute.xlu1 %v1357_v54  ;;  %1287 = vset.pattern.permute.xlu0 %v1357_v54 }
 0x420   : > { %1299 = vtanh.f32 %v646_v55  ;;  %v833_v55 = vsub.s32 1, %v1557_v13 }
 0x421   : > { %v655_v1 = vpop.permute.xlu0 %654 }
 0x422   : > { %v657_v5 = vmul.f32 %v1298_v52, %v655_v1 }
 0x42d   : > { %v1300_v0 = vpop.eup %1299 }
 0x42e   : > { %650 = vrot.lane.b32.xlu1 %v1300_v0, %s1354_s12 }
 0x4a0   : > { %v651_v4 = vpop.permute.xlu1 %650 }
 0x4a1   : > { %v653_v6 = vmul.f32 %v651_v4, %v648_v2 }
 0x4a3   : > { %v658_v7 = vadd.f32 %v657_v5, %v653_v6 }
 0x4a5   : > { %660 = vrot.lane.b32.xlu1 %v658_v7, %s1354_s12  ;;  %s1358_s12 = smov [#allocation3]  }
 0x4a6   : > { %s1109_s23 = sshll.u32 %s1358_s12, 4  ;;  %s1110_s23 = int_to_ptr.vmem [resolvable:$true] %s1109_s23 }
 0x4a7   : > { %s1315_s25 = scalar_lea.vmem %s1110_s23, 224  ;;  %p1322_p8 = scmp.lt.s32.totalorder %s1110_s23, %s1110_s23 }
 0x4a8   : > { %p1316_p5 = scmp.ne.s32.totalorder %s1110_s23, %s1315_s25  ;;  %p1323_p9 = scmp.lt.s32.totalorder %s1315_s25, %s1315_s25 }
 0x4aa   : > { %p1317_p6 = pnand %p1316_p5, %p1268_p4  ;;  %p1324_p10 = por %p1323_p9, %p1322_p8 }
 0x4ac   : > { %p1318_p7 = pneg %p1317_p6 }
 0x4ae   : > { %p1325_p11 = pnand %p1324_p10, %p1318_p7 }
 0x517   : > { %v661_v8 = vpop.permute.xlu1 %660 }
 0x518   : > { %663 = vst.msk [vmem:[#allocation2 + $0x2] sm:$0x3] %vm457_vm3, %v661_v8  ;;  %1240 = vmatmul.mubr.msk.f32.vlgmr.msra.gmra.mxu1 %vm350_vm2, %v661_v8  ;;  %1251 = vmatmul.mubr.msk.f32.vlgmr.msra.gmra.mxu0 %vm350_vm2, %v661_v8 }
 0x519   : > { %1261 = vmatprep.mubr.msk.f32.mxu1 %vm1352_vm1, %v1351_v3 }
 0x5d8   : > { %v740_v15 = vpop.f32.mrf.mxu1  ;;  %v1560_v16 = vpop.f32.mrf.mxu0 }
 0x5d9   : > { %v751_v17 = vrot.slane %v740_v15, %v750_v14 }
 0x5da   : > { %v1241_v19 = vpop.f32.mrf.mxu1  ;;  %v1252_v20 = vpop.f32.mrf.mxu0 }
 0x5db   : > { %v752_v21 = vcombine.high %v751_v17, %v751_v17  ;;  %v759_v22 = vrot.slane %v751_v17, %v750_v14 }
 0x5dd   : > { %v766_v25 = vrot.slane %v752_v21, %v750_v14  ;;  %v770_v26 = vrot.slane %v759_v22, %v1563_v18 }
 0x5df   : > { %v778_v28 = vmul.f32 %v770_v26, %v1568_v23  ;;  %v777_v29 = vmul.f32 %v770_v26, %v1573_v24  ;;  %v774_v30 = vrot.slane %v766_v25, %v1563_v18 }
 0x5e1   : > { %v784_v31 = vsel %vm457_vm3, %v778_v28, 0.0  ;;  %v781_v32 = vsel %vm350_vm2, %v777_v29, 0.0  ;;  %v779_v33 = vmul.f32 %v774_v30, %v1579_v27  ;;  %v780_v36 = vmul.f32 %v774_v30, %v1590_v34 }
 0x5e2   : > { %785 = vadd.xlane.f32.xlu1 %v784_v31  ;;  %782 = vadd.xlane.f32.xlu0 %v781_v32 }
 0x5e3   : > { %v787_v35 = vsel %vm350_vm2, %v779_v33, 0.0  ;;  %v790_v37 = vsel %vm457_vm3, %v780_v36, 0.0  ;;  %v948_v36 = vld [vmem:[%s1662_s8 + $0x8] sm:$0xff] }
 0x5e6   : > { %788 = vadd.xlane.f32.xlu0 %v787_v35  ;;  %v950_v35 = vld [vmem:[%s1662_s8 + $0x18] sm:$0xff] }
 0x5e7   : > { %1254 = vmatpush3.msra.mxu1 %v950_v35 }
 0x5e8   : > { %1255 = vmatprep.subr.mxu1 %v1351_v3 }
 0x5ea   : > { %791 = vadd.xlane.f32.xlu0 %v790_v37  ;;  %v947_v37 = vld [vmem:[%s1662_s8] sm:$0xff] }
 0x66b   : > { %v783_v40 = vpop.xlane.xlu0 %782  ;;  %v786_v43 = vpop.xlane.xlu1 %785 }
 0x66c   : > { %v807_v45 = vrot.slane %v786_v43, %v806_v41  ;;  %v802_v46 = vrot.slane %v783_v40, %v801_v42 }
 0x66e   : > { %v809_v50 = vsel %vm808_vm4, %v807_v45, %v802_v46 }
 0x66f   : > { %v789_v44 = vpop.xlane.xlu0 %788 }
 0x670   : > { %v813_v48 = vrot.slane %v789_v44, %v801_v42 }
 0x673   : > { %v792_v47 = vpop.xlane.xlu0 %791 }
 0x674   : > { %v817_v49 = vrot.slane %v792_v47, %v806_v41 }
 0x676   : > { %v818_v51 = vsel %vm808_vm4, %v817_v49, %v813_v48 }
 0x677   : > { %v820_v52 = vsel %vm819_vm5, %v818_v51, %v809_v50 }
 0x678   : > { %v823_v53 = vsel %vm822_vm6, %v820_v52, -inf }
 0x679   : > { %824 = vmax.xlane.f32.xlu1 %v823_v53 }
 0x702   : > { %v825_v56 = vpop.xlane.xlu1 %824 }
 0x703   : > { %v830_v57 = vrot.slane %v825_v56, %v1563_v18  ;;  %v834_v58 = vrot.slane %v825_v56, %v833_v55 }
 0x705   : > { %v837_v59 = vsub.f32 %v783_v40, %v830_v57  ;;  %v838_v60 = vsub.f32 %v786_v43, %v830_v57  ;;  %v839_v61 = vsub.f32 %v789_v44, %v834_v58  ;;  %v840_v0 = vsub.f32 %v792_v47, %v834_v58 }
 0x707   : > { %v841_v62 = vmul.f32 1.442695, %v837_v59  ;;  %v843_v63 = vmul.f32 1.442695, %v838_v60  ;;  %v845_v1 = vmul.f32 1.442695, %v839_v61 }
 0x708   : > { %v847_v2 = vmul.f32 1.442695, %v840_v0 }
 0x709   : > { %1301 = vpow2.f32 %v841_v62 }
 0x70a   : > { %1303 = vpow2.f32 %v843_v63 }
 0x70b   : > { %1305 = vpow2.f32 %v845_v1 }
 0x70c   : > { %1307 = vpow2.f32 %v847_v2 }
 0x716   : > { %v1302_v4 = vpop.eup %1301 }
 0x717   : > { %v1304_v5 = vpop.eup %1303  ;;  %854 = vperm.xlu0 %1287, %v1302_v4  }
 0x718   : > { %857 = vperm.xlu1 %1288, %v1304_v5   ;;  %v1306_v6 = vpop.eup %1305 }
 0x719   : > { %v1308_v7 = vpop.eup %1307 }
 0x71c   : > { %860 = vperm.xlu1 %1288, %v1306_v6  }
 0x720   : > { %863 = vperm.xlu1 %1288, %v1308_v7  }
 0x792   : > { %v855_v9 = vpop.permute.xlu0 %854 }
 0x793   : > { %v858_v8 = vpop.permute.xlu1 %857  ;;  %v868_v12 = vrot.slane %v855_v9, %v801_v42 }
 0x794   : > { %v872_v11 = vrot.slane %v858_v8, %v806_v41 }
 0x796   : > { %v873_v17 = vsel %vm808_vm4, %v872_v11, %v868_v12 }
 0x797   : > { %v861_v10 = vpop.permute.xlu1 %860 }
 0x798   : > { %v877_v14 = vrot.slane %v861_v10, %v801_v42 }
 0x79b   : > { %v864_v13 = vpop.permute.xlu1 %863 }
 0x79c   : > { %v881_v15 = vrot.slane %v864_v13, %v806_v41 }
 0x79e   : > { %v882_v19 = vsel %vm808_vm4, %v881_v15, %v877_v14 }
 0x79f   : > { %v883_v20 = vsel %vm819_vm5, %v882_v19, %v873_v17 }
 0x7a0   : > { %v885_v21 = vsel %vm822_vm6, %v883_v20, 0.0 }
 0x7a1   : > { %886 = vadd.xlane.f32.xlu1 %v885_v21 }
 0x82a   : > { %v887_v22 = vpop.xlane.xlu1 %886 }
 0x82b   : > { %v892_v25 = vrot.slane %v887_v22, %v1563_v18  ;;  %v896_v26 = vrot.slane %v887_v22, %v833_v55  ;;  %v949_v18 = vld [vmem:[%s1662_s8 + $0x10] sm:$0xff] }
 0x82c   : > { %1256 = vmatpush3.msra.mxu1 %v949_v18 }
 0x82d   : > { %1309 = vrcp.f32 %v892_v25  ;;  %1257 = vmatprep.subr.mxu1 %v1351_v3 }
 0x82e   : > { %1311 = vrcp.f32 %v896_v26  ;;  %1258 = vmatpush3.msra.mxu1 %v948_v36 }
 0x82f   : > { %1259 = vmatprep.subr.mxu1 %v1351_v3 }
 0x830   : > { %1260 = vmatpush3.msra.mxu1 %v947_v37 }
 0x83a   : > { %v1310_v28 = vpop.eup %1309 }
 0x83b   : > { %v900_v29 = vmul.f32 %v1310_v28, %v1302_v4  ;;  %v901_v30 = vmul.f32 %v1310_v28, %v1304_v5  ;;  %v1312_v31 = vpop.eup %1311 }
 0x83c   : > { %v903_v32 = vmul.f32 %v1312_v31, %v1306_v6  ;;  %v904_v33 = vmul.f32 %v1312_v31, %v1308_v7 }
 0x83d   : > { %907 = vperm.xlu0 %1287, %v900_v29  }
 0x841   : > { %912 = vperm.xlu0 %1287, %v901_v30  }
 0x845   : > { %917 = vperm.xlu0 %1287, %v903_v32  }
 0x849   : > { %922 = vperm.xlu0 %1287, %v904_v33  }
 0x8b8   : > { %v908_v38 = vpop.permute.xlu0 %907 }
 0x8b9   : > { %v925_v39 = vmul.f32 %v908_v38, %v1573_v24 }
 0x8bb   : > { %v929_v42 = vsel %vm350_vm2, %v925_v39, 0.0 }
 0x8bc   : > { %v913_v40 = vpop.permute.xlu0 %912 }
 0x8bd   : > { %v926_v41 = vmul.f32 %v913_v40, %v1568_v23 }
 0x8bf   : > { %v930_v43 = vsel %vm457_vm3, %v926_v41, 0.0 }
 0x8c0   : > { %v931_v44 = vadd.f32 %v930_v43, %v929_v42  ;;  %v918_v45 = vpop.permute.xlu0 %917 }
 0x8c1   : > { %v927_v47 = vmul.f32 %v918_v45, %v1579_v27 }
 0x8c2   : > { %v932_v46 = vrot.slane %v931_v44, 4 }
 0x8c3   : > { %v938_v50 = vsel %vm350_vm2, %v927_v47, 0.0 }
 0x8c4   : > { %v933_v48 = vadd.f32 %v932_v46, %v931_v44  ;;  %v923_v49 = vpop.permute.xlu0 %922 }
 0x8c5   : > { %v928_v3 = vmul.f32 %v923_v49, %v1590_v34 }
 0x8c6   : > { %v934_v51 = vrot.slane %v933_v48, 2 }
 0x8c7   : > { %v939_v24 = vsel %vm457_vm3, %v928_v3, 0.0 }
 0x8c8   : > { %v940_v52 = vadd.f32 %v939_v24, %v938_v50  ;;  %v935_v53 = vadd.f32 %v934_v51, %v933_v48 }
 0x8ca   : > { %v941_v23 = vrot.slane %v940_v52, 4  ;;  %v936_v56 = vrot.slane %v935_v53, 1 }
 0x8cc   : > { %v942_v54 = vadd.f32 %v941_v23, %v940_v52  ;;  %v937_v27 = vadd.f32 %v936_v56, %v935_v53 }
 0x8ce   : > { %v943_v55 = vrot.slane %v942_v54, 2 }
 0x8d0   : > { %v944_v57 = vadd.f32 %v943_v55, %v942_v54 }
 0x8d2   : > { %v945_v58 = vrot.slane %v944_v57, 1 }
 0x8d4   : > { %v946_v59 = vadd.f32 %v945_v58, %v944_v57 }
 0x8d6   : > { %v1027_v34 = vsel %vm819_vm5, %v946_v59, %v937_v27 }
 0x8d7   : > { %1262 = vmatmul.mubr.msk.f32.vlgmr.msra.gmra.mxu1 %vm350_vm2, %v1027_v34 }
 0x997   : > { %v1096_v60 = vpop.f32.mrf.mxu1 }
 0x998   : > { %v1097_v61 = vadd.f32 %v1096_v60, %v1560_v16 }
 0x999   : > { %v1263_v62 = vpop.f32.mrf.mxu1 }
 0x99a   : > { %1313 = vtanh.f32 %v1097_v61 }
 0x9a7   : > { %v1314_v63 = vpop.eup %1313 }
 0x9a8   : > { %1102 = vst.msk [vmem:[%s1101_s24] sm:$0x3] %vm457_vm3, %v1314_v63 }
 0x9a9   : > { %1328 = shalt.err (!%p1325_p11)
}
 0x9aa   : > { %s1359_s26 = smov 2  }
 0x9ab   : > { %1265 = dma.vmem_to_hbm [thread:$0]  (%p1268_p4), %s1110_s23, 224, %s1664_s10, [#allocation4], %s1355_s17, %s1355_s17, %s1359_s26  }
 0x9ac   : > { %1344 = dma.done.wait (%p1268_p4), [#allocation4], 224  }
 0x9ad   : > { %1346 = vsyncadd (%p1268_p4), [#allocation4], 4294967072 }
 0x9ae PF: > { %s21_s13 = sadd.s32 1, %s1349_s13  }
 0x9af   : > { %p18_p12 = scmp.ge.s32.totalorder %s21_s13, 9  }
 0x9b1   :  { %20 = sbr.rel (!%p18_p12) target bundleno = 1 (0x1), region = 93 }
 0x9b6   :  { %1125 = vsyncpa [#allocation4], 1 }
 0x9b7   :  { %1127 = vsyncpa [#allocation4 + $0x1], 1 }

</bundles_post_ra>
